<compile_context>
chip_gen: v6e
topology: v6e:2x2x1
jax: 0.10.0
libtpu: 0.0.40
codegen_flags: <defaults>
</compile_context>

<pallas_src>
import jax
import jax.numpy as jnp
import numpy as np
from jax.experimental import pallas as pl
from jax.experimental.pallas import tpu as pltpu

EPS = 1e-5     # nn.BatchNorm2d default eps
LANE = 128     # TPU lane width; Cout is zero-padded up to a multiple of this


def conv_stats_kernel(p_ref, w_ref, y_ref, stat_ref):
    """Pass 1: one (B*H*W, 9*Cin) @ (9*Cin, Cp) bf16 MXU matmul per step.

    Emits the conv activation (bf16, lane-dense Cp) plus per-step partial
    BatchNorm statistics (row 0 = per-channel sum, row 1 = sum of squares).
    """
    acc = jnp.dot(p_ref[...], w_ref[...],
                  preferred_element_type=jnp.float32)          # (B*H*W, Cp) f32
    y_ref[...] = acc.astype(y_ref.dtype)
    stat_ref[0, 0:1, :] = jnp.sum(acc, axis=0, keepdims=True)
    stat_ref[0, 1:2, :] = jnp.sum(acc * acc, axis=0, keepdims=True)


def bn_relu_pool_kernel(y_ref, scale_ref, bias_ref, out_ref, scr_ref):
    """Pass 2: folded BN (scale/bias) -> ReLU -> MaxPool2d(3, 2, 1).

    y_ref:   (B, Ho, 2*W, Cp) bf16 conv activation; columns [0, W) hold conv
             row 2*ho of each image, columns [W, 2*W) hold conv row 2*ho + 1.
    out_ref: (B, Ho, Wo, Cp) f32, Wo = W // 2.
    scr_ref: (B, Ho, W + 8, Cp) f32 scratch; the row-reduced plane lives at an
             8-aligned sublane offset (cols 8..W+7) and the single zero column
             at index 7 is the pool's left padding.
    """
    B, Ho, W2, Cp = y_ref.shape
    W = W2 // 2
    Wo = out_ref.shape[2]

    scale = scale_ref[...]                                     # (1, Cp)
    bias = bias_ref[...]

    # BN + ReLU on the even / odd conv rows (aligned sublane slabs, no rotate).
    r_e = jnp.maximum(y_ref[:, :, 0:W, :].astype(jnp.float32) * scale + bias, 0.0)
    r_o = jnp.maximum(y_ref[:, :, W:2 * W, :].astype(jnp.float32) * scale + bias, 0.0)

    # Row (dh) reduction of the 3x3/s2/p1 window: output row ho covers conv
    # rows {2ho-1, 2ho, 2ho+1}; row 2ho-1 is the previous odd row (zero for
    # ho=0 -- exact because pooling runs after ReLU, so every value is >= 0).
    r_u = jnp.concatenate(
        [jnp.zeros((B, 1, W, Cp), jnp.float32), r_o[:, :Ho - 1]], axis=1)
    vmax = jnp.maximum(jnp.maximum(r_e, r_o), r_u)             # (B, Ho, W, Cp)

    # Column (dw) reduction + stride-2 subsample: aligned bulk store at sublane
    # offset 8, one tiny zero-column store, three strided reads (was nine).
    # The zero column is never overwritten, so re-zeroing it is a single cheap
    # masked store per step (kept for correctness across persistent scratch).
    scr_ref[:, :, 7:8, :] = jnp.zeros((B, Ho, 1, Cp), jnp.float32)
    scr_ref[:, :, 8:8 + W, :] = vmax
    m = scr_ref[:, :, pl.ds(7, Wo, stride=2), :]                   # cols 2wo-1
    m = jnp.maximum(m, scr_ref[:, :, pl.ds(8, Wo, stride=2), :])   # cols 2wo
    m = jnp.maximum(m, scr_ref[:, :, pl.ds(9, Wo, stride=2), :])   # cols 2wo+1
    out_ref[...] = m


def _pick_image_block(N, H, W, K, Cp):
    """Largest divisor B of N with ~<=2k matmul rows and a small VMEM footprint."""
    Ho, Wo = H // 2, W // 2
    budget = 8 * 1024 * 1024         # far inside every generation (v7x: 64 MiB phys)
    lanes_k = ((K + LANE - 1) // LANE) * LANE   # K axis is lane-padded inside VMEM
    best = 1
    for b in range(1, N + 1):
        if N % b:
            continue
        rows = b * H * W
        p1 = 2 * rows * lanes_k * 2 + 2 * rows * Cp * 2          # patches + act (bf16, dbl-buffered)
        p2 = (2 * rows * Cp * 2 + 2 * b * Ho * Wo * Cp * 4       # act in + pooled out (dbl-buffered)
              + b * Ho * (W + 8) * Cp * 4)                       # f32 pool scratch
        if rows <= 2048 and max(p1, p2) <= budget:
            best = b
    # TODO(synk): tile the spatial dims as well if a single image (B=1) no
    # longer fits the VMEM budget (very large H, W on v7x).
    return best


def dynconv_forward(x_nchw, w_oihw, gamma, beta, eps=EPS):
    N, Cin, H, W = x_nchw.shape
    Cout = w_oihw.shape[0]
    assert H % 2 == 0 and W % 2 == 0, "pool output-size mapping assumes even H, W"
    assert (H * W) % 16 == 0, "bf16 block alignment assumes H*W % 16 == 0"
    Cp = ((Cout + LANE - 1) // LANE) * LANE
    K = 9 * Cin
    Ho, Wo = H // 2, W // 2
    B = _pick_image_block(N, H, W, K, Cp)
    Nb = N // B
    Mb = B * H * W

    # ---- tiny XLA prep: im2col patches + reshaped/padded weights, both bf16 ----
    x_pad = jnp.pad(jnp.transpose(x_nchw, (0, 2, 3, 1)),
                    ((0, 0), (1, 1), (1, 1), (0, 0)))            # (N, H+2, W+2, Cin)
    cols = [x_pad[:, kh:kh + H, kw:kw + W, :]
            for kh in range(3) for kw in range(3)]
    patches = jnp.concatenate(cols, axis=-1).reshape(N * H * W, K)
    patches = patches.astype(jnp.bfloat16)
    # (Cout, Cin, 3, 3) -> (kh, kw, cin, cout) -> (9*Cin, Cp); lane axis = padded Cout.
    w_k = jnp.transpose(w_oihw, (2, 3, 1, 0)).reshape(K, Cout)
    w_k = jnp.pad(w_k, ((0, 0), (0, Cp - Cout))).astype(jnp.bfloat16)

    params = pltpu.CompilerParams(dimension_semantics=("parallel",),
                                  vmem_limit_bytes=32 * 1024 * 1024)

    # ---- pass 1: conv matmul + bf16 activation + partial BN statistics ----
    y_flat, stats = pl.pallas_call(
        conv_stats_kernel,
        out_shape=(jax.ShapeDtypeStruct((N * H * W, Cp), jnp.bfloat16),
                   jax.ShapeDtypeStruct((Nb, 2, Cp), jnp.float32)),
        grid=(Nb,),
        in_specs=[pl.BlockSpec((Mb, K), lambda i: (i, 0)),
                  pl.BlockSpec((K, Cp), lambda i: (0, 0))],
        out_specs=[pl.BlockSpec((Mb, Cp), lambda i: (i, 0)),
                   pl.BlockSpec((1, 2, Cp), lambda i: (i, 0, 0))],
        compiler_params=params,
    )(patches, w_k)

    # Finalize global training-mode (biased) BN stats and fold them with the
    # affine params into one per-channel scale/bias (tiny 128-lane XLA ops).
    # E[x^2]-E[x]^2 is cancellation-prone if |mean| >> std; the clamp guards it.
    cnt = float(N * H * W)
    mean = jnp.sum(stats[:, 0, :], axis=0) / cnt
    var = jnp.maximum(jnp.sum(stats[:, 1, :], axis=0) / cnt - mean * mean, 0.0)
    gamma_p = jnp.pad(gamma.astype(jnp.float32), (0, Cp - Cout))
    beta_p = jnp.pad(beta.astype(jnp.float32), (0, Cp - Cout))
    scale = gamma_p * jax.lax.rsqrt(var + eps)
    bias = beta_p - mean * scale

    # Free reshape so even / odd conv rows of each image sit side by side on
    # the sublane axis: row n*H*W + h*W + w  ->  [n, h//2, (h%2)*W + w].
    y4 = y_flat.reshape(N, Ho, 2 * W, Cp)

    # ---- pass 2: fused BN + ReLU + maxpool, lane-dense output ----
    pooled = pl.pallas_call(
        bn_relu_pool_kernel,
        out_shape=jax.ShapeDtypeStruct((N, Ho, Wo, Cp), jnp.float32),
        grid=(Nb,),
        in_specs=[pl.BlockSpec((B, Ho, 2 * W, Cp), lambda i: (i, 0, 0, 0)),
                  pl.BlockSpec((1, Cp), lambda i: (0, 0)),
                  pl.BlockSpec((1, Cp), lambda i: (0, 0))],
        out_specs=pl.BlockSpec((B, Ho, Wo, Cp), lambda i: (i, 0, 0, 0)),
        scratch_shapes=[pltpu.VMEM((B, Ho, W + 8, Cp), jnp.float32)],
        compiler_params=params,
    )(y4, scale.reshape(1, Cp), bias.reshape(1, Cp))

    # Back to the module's NCHW layout, dropping the channel padding.
    return jnp.transpose(pooled[..., :Cout], (0, 3, 1, 2))


def reference_forward(x_nchw, w_oihw, gamma, beta):
    """Pure-JAX reference mirroring the PyTorch forward (training-mode BN)."""
    y = jax.lax.conv_general_dilated(
        x_nchw, w_oihw, window_strides=(1, 1), padding=((1, 1), (1, 1)),
        dimension_numbers=("NCHW", "OIHW", "NCHW"),
        precision=jax.lax.Precision.HIGHEST)
    mean = jnp.mean(y, axis=(0, 2, 3), keepdims=True)
    var = jnp.mean((y - mean) ** 2, axis=(0, 2, 3), keepdims=True)
    y_hat = (y - mean) * jax.lax.rsqrt(var + EPS)
    y_hat = y_hat * gamma.reshape(1, -1, 1, 1) + beta.reshape(1, -1, 1, 1)
    r = jnp.maximum(y_hat, 0.0)
    return jax.lax.reduce_window(
        r, -jnp.inf, jax.lax.max,
        window_dimensions=(1, 1, 3, 3), window_strides=(1, 1, 2, 2),
        padding=((0, 0), (0, 0), (1, 1), (1, 1)))


if __name__ == "__main__":
    key = jax.random.PRNGKey(0)
    k1, k2, k3, k4 = jax.random.split(key, 4)
    N, Cin, H, W, Cout = 2, 3, 16, 16, 16   # module defaults: 3 -> 16 channels

    x = jax.random.normal(k1, (N, Cin, H, W), jnp.float32)
    # Conv2d weight (Cout, Cin, 3, 3), bias=False.
    fan_in = Cin * 3 * 3
    w = jax.random.uniform(k2, (Cout, Cin, 3, 3), jnp.float32,
                           minval=-1.0, maxval=1.0) / np.sqrt(fan_in)
    # BatchNorm affine params (torch defaults are ones/zeros; use random values
    # to exercise the affine path, deterministically seeded).
    gamma = 1.0 + 0.1 * jax.random.normal(k3, (Cout,), jnp.float32)
    beta = 0.1 * jax.random.normal(k4, (Cout,), jnp.float32)

    out = jax.block_until_ready(jax.jit(dynconv_forward)(x, w, gamma, beta))
    ref = jax.block_until_ready(reference_forward(x, w, gamma, beta))

    assert out.shape == (N, Cout, H // 2, W // 2), out.shape
    np.testing.assert_allclose(np.asarray(out), np.asarray(ref), atol=1e-2, rtol=1e-2)
    print("KERNEL_OK")
</pallas_src>

<mosaic_0001>
module attributes {stable_mosaic.version = 11 : i64} {
  func.func @bn_relu_pool_kernel(%arg0: i32, %arg1: memref<2x8x32x128xbf16, #tpu.memory_space<vmem>>, %arg2: memref<1x128xf32, #tpu.memory_space<vmem>>, %arg3: memref<1x128xf32, #tpu.memory_space<vmem>>, %arg4: memref<2x8x8x128xf32, #tpu.memory_space<vmem>>, %arg5: memref<2x8x24x128xf32, #tpu.memory_space<vmem>>) attributes {dimension_semantics = [#tpu.dimension_semantics<parallel>], iteration_bounds = array<i64: 1>, scalar_prefetch = 0 : i64, scratch_operands = 1 : i64, tpu.core_type = #tpu.core_type<tc>, window_params = [{transform_indices = @transform_0, window_bounds = array<i64: 2, 8, 32, 128>}, {pipeline_mode = #tpu.pipeline_mode<synchronous>, transform_indices = @transform_1, window_bounds = array<i64: 1, 128>}, {pipeline_mode = #tpu.pipeline_mode<synchronous>, transform_indices = @transform_2, window_bounds = array<i64: 1, 128>}, {transform_indices = @transform_3, window_bounds = array<i64: 2, 8, 8, 128>}]} {
    %c0 = arith.constant 0 : index
    %c0_0 = arith.constant 0 : index
    %0 = vector.load %arg2[%c0, %c0_0] : memref<1x128xf32, #tpu.memory_space<vmem>>, vector<1x128xf32>
    %c0_1 = arith.constant 0 : index
    %c0_2 = arith.constant 0 : index
    %1 = vector.load %arg3[%c0_1, %c0_2] : memref<1x128xf32, #tpu.memory_space<vmem>>, vector<1x128xf32>
    %c0_3 = arith.constant 0 : index
    %c0_4 = arith.constant 0 : index
    %c0_5 = arith.constant 0 : index
    %c0_6 = arith.constant 0 : index
    %2 = vector.load %arg1[%c0_3, %c0_4, %c0_5, %c0_6] : memref<2x8x32x128xbf16, #tpu.memory_space<vmem>>, vector<2x8x16x128xbf16>
    %3 = arith.extf %2 : vector<2x8x16x128xbf16> to vector<2x8x16x128xf32>
    %4 = vector.shape_cast %0 : vector<1x128xf32> to vector<1x1x1x128xf32>
    %5 = vector.broadcast %4 : vector<1x1x1x128xf32> to vector<2x8x16x128xf32>
    %6 = arith.mulf %3, %5 : vector<2x8x16x128xf32>
    %7 = vector.shape_cast %1 : vector<1x128xf32> to vector<1x1x1x128xf32>
    %8 = vector.broadcast %7 : vector<1x1x1x128xf32> to vector<2x8x16x128xf32>
    %9 = arith.addf %6, %8 : vector<2x8x16x128xf32>
    %cst = arith.constant 0.000000e+00 : f32
    %10 = vector.broadcast %cst : f32 to vector<2x8x16x128xf32>
    %11 = arith.maximumf %9, %10 : vector<2x8x16x128xf32>
    %c0_7 = arith.constant 0 : index
    %c0_8 = arith.constant 0 : index
    %c16 = arith.constant 16 : index
    %c0_9 = arith.constant 0 : index
    %12 = vector.load %arg1[%c0_7, %c0_8, %c16, %c0_9] : memref<2x8x32x128xbf16, #tpu.memory_space<vmem>>, vector<2x8x16x128xbf16>
    %13 = arith.extf %12 : vector<2x8x16x128xbf16> to vector<2x8x16x128xf32>
    %14 = vector.shape_cast %0 : vector<1x128xf32> to vector<1x1x1x128xf32>
    %15 = vector.broadcast %14 : vector<1x1x1x128xf32> to vector<2x8x16x128xf32>
    %16 = arith.mulf %13, %15 : vector<2x8x16x128xf32>
    %17 = vector.shape_cast %1 : vector<1x128xf32> to vector<1x1x1x128xf32>
    %18 = vector.broadcast %17 : vector<1x1x1x128xf32> to vector<2x8x16x128xf32>
    %19 = arith.addf %16, %18 : vector<2x8x16x128xf32>
    %cst_10 = arith.constant 0.000000e+00 : f32
    %20 = vector.broadcast %cst_10 : f32 to vector<2x8x16x128xf32>
    %21 = arith.maximumf %19, %20 : vector<2x8x16x128xf32>
    %cst_11 = arith.constant 0.000000e+00 : f32
    %22 = vector.broadcast %cst_11 : f32 to vector<2x1x16x128xf32>
    %23 = vector.extract_strided_slice %21 {offsets = [0, 0, 0, 0], sizes = [2, 7, 16, 128], strides = [1, 1, 1, 1]} : vector<2x8x16x128xf32> to vector<2x7x16x128xf32>
    %24 = tpu.concatenate %22, %23 in 1 : vector<2x1x16x128xf32>, vector<2x7x16x128xf32> -> vector<2x8x16x128xf32>
    %25 = arith.maximumf %11, %21 : vector<2x8x16x128xf32>
    %26 = arith.maximumf %25, %24 : vector<2x8x16x128xf32>
    %cst_12 = arith.constant 0.000000e+00 : f32
    %27 = vector.broadcast %cst_12 : f32 to vector<2x8x1x128xf32>
    %c0_13 = arith.constant 0 : index
    %c0_14 = arith.constant 0 : index
    %c7 = arith.constant 7 : index
    %c0_15 = arith.constant 0 : index
    %28 = vector.load %arg5[%c0_13, %c0_14, %c7, %c0_15] : memref<2x8x24x128xf32, #tpu.memory_space<vmem>>, vector<2x8x1x128xf32>
    tpu.vector_store %arg5[%c0_13, %c0_14, %c7, %c0_15], %27 {strides = array<i32>} : memref<2x8x24x128xf32, #tpu.memory_space<vmem>>, vector<2x8x1x128xf32>,
    %c0_16 = arith.constant 0 : index
    %c0_17 = arith.constant 0 : index
    %c8 = arith.constant 8 : index
    %c0_18 = arith.constant 0 : index
    %29 = vector.load %arg5[%c0_16, %c0_17, %c8, %c0_18] : memref<2x8x24x128xf32, #tpu.memory_space<vmem>>, vector<2x8x16x128xf32>
    tpu.vector_store %arg5[%c0_16, %c0_17, %c8, %c0_18], %26 {strides = array<i32>} : memref<2x8x24x128xf32, #tpu.memory_space<vmem>>, vector<2x8x16x128xf32>,
    %c0_19 = arith.constant 0 : index
    %c0_20 = arith.constant 0 : index
    %c7_21 = arith.constant 7 : index
    %c0_22 = arith.constant 0 : index
    %30 = tpu.strided_load %arg5[%c0_19, %c0_20, %c7_21, %c0_22] {strides = array<i32: 1, 1, 2, 1>} : memref<2x8x24x128xf32, #tpu.memory_space<vmem>>, vector<2x8x8x128xf32>
    %c0_23 = arith.constant 0 : index
    %c0_24 = arith.constant 0 : index
    %c8_25 = arith.constant 8 : index
    %c0_26 = arith.constant 0 : index
    %31 = tpu.strided_load %arg5[%c0_23, %c0_24, %c8_25, %c0_26] {strides = array<i32: 1, 1, 2, 1>} : memref<2x8x24x128xf32, #tpu.memory_space<vmem>>, vector<2x8x8x128xf32>
    %32 = arith.maximumf %30, %31 : vector<2x8x8x128xf32>
    %c0_27 = arith.constant 0 : index
    %c0_28 = arith.constant 0 : index
    %c9 = arith.constant 9 : index
    %c0_29 = arith.constant 0 : index
    %33 = tpu.strided_load %arg5[%c0_27, %c0_28, %c9, %c0_29] {strides = array<i32: 1, 1, 2, 1>} : memref<2x8x24x128xf32, #tpu.memory_space<vmem>>, vector<2x8x8x128xf32>
    %34 = arith.maximumf %32, %33 : vector<2x8x8x128xf32>
    %c0_30 = arith.constant 0 : index
    %c0_31 = arith.constant 0 : index
    %c0_32 = arith.constant 0 : index
    %c0_33 = arith.constant 0 : index
    %35 = vector.load %arg4[%c0_30, %c0_31, %c0_32, %c0_33] : memref<2x8x8x128xf32, #tpu.memory_space<vmem>>, vector<2x8x8x128xf32>
    tpu.vector_store %arg4[%c0_30, %c0_31, %c0_32, %c0_33], %34 {strides = array<i32>} : memref<2x8x8x128xf32, #tpu.memory_space<vmem>>, vector<2x8x8x128xf32>,
    return
  }
  func.func @transform_0(%arg0: i32) -> (i32, i32, i32, i32) {
    %c0_i32 = arith.constant 0 : i32
    %c0_i32_0 = arith.constant 0 : i32
    %c0_i32_1 = arith.constant 0 : i32
    %c0_i32_2 = arith.constant 0 : i32
    return %arg0, %c0_i32, %c0_i32_0, %c0_i32_1 : i32, i32, i32, i32
  }
  func.func @transform_1(%arg0: i32) -> (i32, i32) {
    %c0_i32 = arith.constant 0 : i32
    %c0_i32_0 = arith.constant 0 : i32
    %c0_i32_1 = arith.constant 0 : i32
    return %c0_i32, %c0_i32_0 : i32, i32
  }
  func.func @transform_2(%arg0: i32) -> (i32, i32) {
    %c0_i32 = arith.constant 0 : i32
    %c0_i32_0 = arith.constant 0 : i32
    %c0_i32_1 = arith.constant 0 : i32
    return %c0_i32, %c0_i32_0 : i32, i32
  }
  func.func @transform_3(%arg0: i32) -> (i32, i32, i32, i32) {
    %c0_i32 = arith.constant 0 : i32
    %c0_i32_0 = arith.constant 0 : i32
    %c0_i32_1 = arith.constant 0 : i32
    %c0_i32_2 = arith.constant 0 : i32
    return %arg0, %c0_i32, %c0_i32_0, %c0_i32_1 : i32, i32, i32, i32
  }
}

module attributes {stable_mosaic.version = 11 : i64} {
  func.func @conv_stats_kernel(%arg0: i32, %arg1: memref<512x27xbf16, #tpu.memory_space<vmem>>, %arg2: memref<27x128xbf16, #tpu.memory_space<vmem>>, %arg3: memref<512x128xbf16, #tpu.memory_space<vmem>>, %arg4: memref<1x2x128xf32, #tpu.memory_space<vmem>>) attributes {dimension_semantics = [#tpu.dimension_semantics<parallel>], iteration_bounds = array<i64: 1>, scalar_prefetch = 0 : i64, scratch_operands = 0 : i64, tpu.core_type = #tpu.core_type<tc>, window_params = [{transform_indices = @transform_0, window_bounds = array<i64: 512, 27>}, {pipeline_mode = #tpu.pipeline_mode<synchronous>, transform_indices = @transform_1, window_bounds = array<i64: 27, 128>}, {transform_indices = @transform_2, window_bounds = array<i64: 512, 128>}, {transform_indices = @transform_3, window_bounds = array<i64: 1, 2, 128>}]} {
    %c0 = arith.constant 0 : index
    %c0_0 = arith.constant 0 : index
    %0 = vector.load %arg1[%c0, %c0_0] : memref<512x27xbf16, #tpu.memory_space<vmem>>, vector<512x27xbf16>
    %c0_1 = arith.constant 0 : index
    %c0_2 = arith.constant 0 : index
    %1 = vector.load %arg2[%c0_1, %c0_2] : memref<27x128xbf16, #tpu.memory_space<vmem>>, vector<27x128xbf16>
    %cst = arith.constant dense<0.000000e+00> : vector<512x128xf32>
    %2 = tpu.matmul %0, %1, %cst {dimension_numbers = #tpu.dot_dimension_numbers<[1], [0], [0], [1], [0, 0, 1, 1], [], []>} : vector<512x27xbf16>, vector<27x128xbf16>, vector<512x128xf32> -> vector<512x128xf32>
    %3 = arith.truncf %2 : vector<512x128xf32> to vector<512x128xbf16>
    %c0_3 = arith.constant 0 : index
    %c0_4 = arith.constant 0 : index
    %4 = vector.load %arg3[%c0_3, %c0_4] : memref<512x128xbf16, #tpu.memory_space<vmem>>, vector<512x128xbf16>
    tpu.vector_store %arg3[%c0_3, %c0_4], %3 {strides = array<i32>} : memref<512x128xbf16, #tpu.memory_space<vmem>>, vector<512x128xbf16>,
    %cst_5 = arith.constant dense<0.000000e+00> : vector<128xf32>
    %5 = vector.multi_reduction <add>, %2, %cst_5 [0] : vector<512x128xf32> to vector<128xf32>
    %6 = vector.shape_cast %5 : vector<128xf32> to vector<1x128xf32>
    %c0_6 = arith.constant 0 : index
    %c0_7 = arith.constant 0 : index
    %c0_8 = arith.constant 0 : index
    %7 = vector.load %arg4[%c0_6, %c0_7, %c0_8] : memref<1x2x128xf32, #tpu.memory_space<vmem>>, vector<1x1x128xf32>
    %8 = vector.shape_cast %7 : vector<1x1x128xf32> to vector<1x128xf32>
    %9 = vector.shape_cast %6 : vector<1x128xf32> to vector<1x1x128xf32>
    tpu.vector_store %arg4[%c0_6, %c0_7, %c0_8], %9 {strides = array<i32>} : memref<1x2x128xf32, #tpu.memory_space<vmem>>, vector<1x1x128xf32>,
    %10 = arith.mulf %2, %2 : vector<512x128xf32>
    %cst_9 = arith.constant dense<0.000000e+00> : vector<128xf32>
    %11 = vector.multi_reduction <add>, %10, %cst_9 [0] : vector<512x128xf32> to vector<128xf32>
    %12 = vector.shape_cast %11 : vector<128xf32> to vector<1x128xf32>
    %c0_10 = arith.constant 0 : index
    %c1 = arith.constant 1 : index
    %c0_11 = arith.constant 0 : index
    %13 = vector.load %arg4[%c0_10, %c1, %c0_11] : memref<1x2x128xf32, #tpu.memory_space<vmem>>, vector<1x1x128xf32>
    %14 = vector.shape_cast %13 : vector<1x1x128xf32> to vector<1x128xf32>
    %15 = vector.shape_cast %12 : vector<1x128xf32> to vector<1x1x128xf32>
    tpu.vector_store %arg4[%c0_10, %c1, %c0_11], %15 {strides = array<i32>} : memref<1x2x128xf32, #tpu.memory_space<vmem>>, vector<1x1x128xf32>,
    return
  }
  func.func @transform_0(%arg0: i32) -> (i32, i32) {
    %c0_i32 = arith.constant 0 : i32
    %c0_i32_0 = arith.constant 0 : i32
    return %arg0, %c0_i32 : i32, i32
  }
  func.func @transform_1(%arg0: i32) -> (i32, i32) {
    %c0_i32 = arith.constant 0 : i32
    %c0_i32_0 = arith.constant 0 : i32
    %c0_i32_1 = arith.constant 0 : i32
    return %c0_i32, %c0_i32_0 : i32, i32
  }
  func.func @transform_2(%arg0: i32) -> (i32, i32) {
    %c0_i32 = arith.constant 0 : i32
    %c0_i32_0 = arith.constant 0 : i32
    return %arg0, %c0_i32 : i32, i32
  }
  func.func @transform_3(%arg0: i32) -> (i32, i32, i32) {
    %c0_i32 = arith.constant 0 : i32
    %c0_i32_0 = arith.constant 0 : i32
    %c0_i32_1 = arith.constant 0 : i32
    return %arg0, %c0_i32, %c0_i32_0 : i32, i32, i32
  }
}

</mosaic_0001>

<bundles_post_ra>
// kernel: dynconv_forward.3
= control target key start
LH: loop header
LB: loop body
LE: loop exit
PB: predicated region body
PF: predicated region fallthrough
CT: control target
= control target key end

     0   :  { %v770_v0 = vmov 0.0   ;;  %s1096_s0 = inlined_call_operand.vmem [shape: bf16[2,8,32,128], index: 0, kind: input, shape index: {}]   ;;  %s1097_s1 = inlined_call_operand.vmem [shape: f32[1,128], index: 1, kind: input, shape index: {}]   ;;  %s1098_s2 = inlined_call_operand.vmem [shape: f32[1,128], index: 2, kind: input, shape index: {}]   ;;  %s1099_s3 = inlined_call_operand.vmem [shape: f32[2,8,8,128], index: 3, kind: output, shape index: {}]  }
   0x1   :  { %412 = vst [vmem:[#allocation2 + $0x7] sm:$0x1] %v770_v0  ;;  %413 = vst [vmem:[#allocation2 + $0x1f] sm:$0x1] %v770_v0  ;;  %v794_v1 = vld [vmem:[%s1097_s1] ss:$0 sm:$0xff] }
   0x2   :  { %414 = vst [vmem:[#allocation2 + $0x37] sm:$0x1] %v770_v0  ;;  %415 = vst [vmem:[#allocation2 + $0x4f] sm:$0x1] %v770_v0  ;;  %v611_v2 = vld [vmem:[%s1096_s0] sm:$0xff]   ;;  %v753_v4 = vld [vmem:[%s1096_s0 + $0x8] sm:$0xff]  }
   0x3   :  { %416 = vst [vmem:[#allocation2 + $0x67] sm:$0x1] %v770_v0  ;;  %417 = vst [vmem:[#allocation2 + $0x7f] sm:$0x1] %v770_v0  ;;  %v612_v3 = vunpack.c.l.bf16 %v611_v2  ;;  %v613_v5 = vunpack.c.h.bf16 %v611_v2  ;;  %v738_v6 = vld [vmem:[%s1096_s0 + $0x10] sm:$0xff]   ;;  %v754_v7 = vld [vmem:[%s1096_s0 + $0x18] sm:$0xff]   ;;  %v676_v9 = vunpack.c.l.bf16 %v753_v4  ;;  %v677_v10 = vunpack.c.h.bf16 %v753_v4 }
   0x4   :  { %418 = vst [vmem:[#allocation2 + $0x97] sm:$0x1] %v770_v0  ;;  %419 = vst [vmem:[#allocation2 + $0xaf] sm:$0x1] %v770_v0  ;;  %v811_v8 = vld [vmem:[%s1098_s2] ss:$0 sm:$0xff]  ;;  %v616_v11 = vunpack.c.l.bf16 %v738_v6  ;;  %v680_v12 = vunpack.c.l.bf16 %v754_v7  ;;  %v617_v15 = vunpack.c.h.bf16 %v738_v6  ;;  %v681_v16 = vunpack.c.h.bf16 %v754_v7 }
   0x5   :  { %420 = vst [vmem:[#allocation2 + $0xc7] sm:$0x1] %v770_v0  ;;  %421 = vst [vmem:[#allocation2 + $0xdf] sm:$0x1] %v770_v0  ;;  %v86_v13 = vmul.f32 %v612_v3, %v794_v1  ;;  %v87_v14 = vmul.f32 %v613_v5, %v794_v1  ;;  %v252_v17 = vmul.f32 %v676_v9, %v794_v1  ;;  %v739_v29 = vld [vmem:[%s1096_s0 + $0x20] sm:$0xff]   ;;  %v755_v30 = vld [vmem:[%s1096_s0 + $0x28] sm:$0xff]  }
   0x6   :  { %422 = vst [vmem:[#allocation2 + $0xf7] sm:$0x1] %v770_v0  ;;  %423 = vst [vmem:[#allocation2 + $0x10f] sm:$0x1] %v770_v0  ;;  %v253_v18 = vmul.f32 %v677_v10, %v794_v1  ;;  %v88_v19 = vmul.f32 %v616_v11, %v794_v1  ;;  %v254_v20 = vmul.f32 %v680_v12, %v794_v1  ;;  %v620_v41 = vunpack.c.l.bf16 %v739_v29  ;;  %v740_v51 = vld [vmem:[%s1096_s0 + $0x30] sm:$0xff]   ;;  %v756_v52 = vld [vmem:[%s1096_s0 + $0x38] sm:$0xff]  }
   0x7   :  { %424 = vst [vmem:[#allocation2 + $0x127] sm:$0x1] %v770_v0  ;;  %425 = vst [vmem:[#allocation2 + $0x13f] sm:$0x1] %v770_v0  ;;  %v124_v21 = vadd.f32 %v811_v8, %v86_v13  ;;  %v125_v22 = vadd.f32 %v811_v8, %v87_v14  ;;  %v89_v23 = vmul.f32 %v617_v15, %v794_v1  ;;  %v684_v42 = vunpack.c.l.bf16 %v755_v30  ;;  %v741_v2 = vld [vmem:[%s1096_s0 + $0x40] sm:$0xff]   ;;  %v757_v7 = vld [vmem:[%s1096_s0 + $0x48] sm:$0xff]  }
   0x8   :  { %426 = vst [vmem:[#allocation2 + $0x157] sm:$0x1] %v770_v0  ;;  %427 = vst [vmem:[#allocation2 + $0x16f] sm:$0x1] %v770_v0  ;;  %v255_v24 = vmul.f32 %v681_v16, %v794_v1  ;;  %v284_v25 = vadd.f32 %v811_v8, %v252_v17  ;;  %v285_v26 = vadd.f32 %v811_v8, %v253_v18  ;;  %v621_v46 = vunpack.c.h.bf16 %v739_v29 }
   0x9   :  { %v126_v27 = vadd.f32 %v811_v8, %v88_v19  ;;  %v286_v28 = vadd.f32 %v811_v8, %v254_v20  ;;  %v156_v31 = vmax.f32 %v124_v21, 0.0  ;;  %v157_v32 = vmax.f32 %v125_v22, 0.0 }
   0xa   :  { %v127_v33 = vadd.f32 %v811_v8, %v89_v23  ;;  %v835_v34 = vadd.f32 %v811_v8, %v255_v24  ;;  %v316_v35 = vmax.f32 %v284_v25, 0.0  ;;  %v317_v36 = vmax.f32 %v285_v26, 0.0  ;;  %v742_v25 = vld [vmem:[%s1096_s0 + $0x50] sm:$0xff]  }
   0xb   :  { %v158_v37 = vmax.f32 %v126_v27, 0.0  ;;  %v318_v38 = vmax.f32 %v286_v28, 0.0  ;;  %v90_v48 = vmul.f32 %v620_v41, %v794_v1  ;;  %v256_v49 = vmul.f32 %v684_v42, %v794_v1 }
   0xc   :  { %v159_v39 = vmax.f32 %v127_v33, 0.0  ;;  %v319_v40 = vmax.f32 %v835_v34, 0.0  ;;  %v348_v43 = vmax.f32 %v156_v31, %v316_v35  ;;  %v349_v44 = vmax.f32 %v157_v32, %v317_v36 }
   0xd   :  { %v350_v45 = vmax.f32 %v158_v37, %v318_v38  ;;  %v685_v50 = vunpack.c.h.bf16 %v755_v30  ;;  %v91_v56 = vmul.f32 %v621_v46, %v794_v1  ;;  %v128_v58 = vadd.f32 %v811_v8, %v90_v48  ;;  %v758_v30 = vld [vmem:[%s1096_s0 + $0x58] sm:$0xff]  }
   0xe   :  { %v351_v47 = vmax.f32 %v159_v39, %v319_v40  ;;  %v380_v53 = vmax.f32 %v348_v43, 0.0  ;;  %v381_v54 = vmax.f32 %v349_v44, 0.0  ;;  %v288_v59 = vadd.f32 %v811_v8, %v256_v49 }
   0xf   :  { %v382_v55 = vmax.f32 %v350_v45, %v316_v35  ;;  %v257_v60 = vmul.f32 %v685_v50, %v794_v1  ;;  %v129_v61 = vadd.f32 %v811_v8, %v91_v56  ;;  %v624_v62 = vunpack.c.l.bf16 %v740_v51  ;;  %v759_v56 = vld [vmem:[%s1096_s0 + $0x68] sm:$0xff]  }
  0x10   :  { %v383_v57 = vmax.f32 %v351_v47, %v317_v36  ;;  %428 = vst [vmem:[#allocation2 + $0x8] sm:$0xff] %v380_v53  ;;  %429 = vst [vmem:[#allocation2 + $0x10] sm:$0xff] %v381_v54  ;;  %v688_v63 = vunpack.c.l.bf16 %v756_v52  ;;  %v625_v0 = vunpack.c.h.bf16 %v740_v51  ;;  %v160_v3 = vmax.f32 %v128_v58, 0.0  ;;  %v743_v47 = vld [vmem:[%s1096_s0 + $0x60] sm:$0xff]  }
  0x11   :  { %430 = vst [vmem:[#allocation2 + $0x20] sm:$0xff] %v382_v55  ;;  %v320_v4 = vmax.f32 %v288_v59, 0.0  ;;  %v289_v5 = vadd.f32 %v811_v8, %v257_v60  ;;  %v689_v6 = vunpack.c.h.bf16 %v756_v52  ;;  %v161_v9 = vmax.f32 %v129_v61, 0.0 }
  0x12   :  { %431 = vst [vmem:[#allocation2 + $0x28] sm:$0xff] %v383_v57  ;;  %v92_v10 = vmul.f32 %v624_v62, %v794_v1  ;;  %v258_v11 = vmul.f32 %v688_v63, %v794_v1  ;;  %v93_v12 = vmul.f32 %v625_v0, %v794_v1  ;;  %v628_v16 = vunpack.c.l.bf16 %v741_v2 }
  0x13   :  { %v352_v13 = vmax.f32 %v160_v3, %v320_v4  ;;  %v321_v14 = vmax.f32 %v289_v5, 0.0  ;;  %v259_v15 = vmul.f32 %v689_v6, %v794_v1  ;;  %v692_v20 = vunpack.c.l.bf16 %v757_v7 }
  0x14   :  { %v130_v17 = vadd.f32 %v811_v8, %v92_v10  ;;  %v290_v18 = vadd.f32 %v811_v8, %v258_v11  ;;  %v131_v19 = vadd.f32 %v811_v8, %v93_v12  ;;  %v94_v24 = vmul.f32 %v628_v16, %v794_v1  ;;  %v744_v11 = vld [vmem:[%s1096_s0 + $0x70] sm:$0xff]   ;;  %v760_v16 = vld [vmem:[%s1096_s0 + $0x78] sm:$0xff]  }
  0x15   :  { %v384_v21 = vmax.f32 %v352_v13, %v318_v38  ;;  %v353_v22 = vmax.f32 %v161_v9, %v321_v14  ;;  %v291_v23 = vadd.f32 %v811_v8, %v259_v15  ;;  %v260_v29 = vmul.f32 %v692_v20, %v794_v1 }
  0x16   :  { %v162_v26 = vmax.f32 %v130_v17, 0.0  ;;  %v322_v27 = vmax.f32 %v290_v18, 0.0  ;;  %v163_v28 = vmax.f32 %v131_v19, 0.0  ;;  %v132_v33 = vadd.f32 %v811_v8, %v94_v24 }
  0x17   :  { %432 = vst [vmem:[#allocation2 + $0x38] sm:$0xff] %v384_v21  ;;  %v385_v31 = vmax.f32 %v353_v22, %v319_v40  ;;  %v323_v32 = vmax.f32 %v291_v23, 0.0  ;;  %v629_v34 = vunpack.c.h.bf16 %v741_v2  ;;  %v292_v36 = vadd.f32 %v811_v8, %v260_v29 }
  0x18   :  { %v354_v35 = vmax.f32 %v162_v26, %v322_v27  ;;  %v693_v37 = vunpack.c.h.bf16 %v757_v7  ;;  %v632_v38 = vunpack.c.l.bf16 %v742_v25  ;;  %v164_v41 = vmax.f32 %v132_v33, 0.0  ;;  %v745_v33 = vld [vmem:[%s1096_s0 + $0x80] sm:$0xff]  }
  0x19   :  { %433 = vst [vmem:[#allocation2 + $0x40] sm:$0xff] %v385_v31  ;;  %v355_v39 = vmax.f32 %v163_v28, %v323_v32  ;;  %v95_v42 = vmul.f32 %v629_v34, %v794_v1  ;;  %v696_v43 = vunpack.c.l.bf16 %v758_v30  ;;  %v324_v45 = vmax.f32 %v292_v36, 0.0  ;;  %v761_v34 = vld [vmem:[%s1096_s0 + $0x88] sm:$0xff]  }
  0x1a   :  { %v386_v44 = vmax.f32 %v354_v35, %v320_v4  ;;  %v261_v46 = vmul.f32 %v693_v37, %v794_v1  ;;  %v96_v40 = vmul.f32 %v632_v38, %v794_v1  ;;  %v633_v51 = vunpack.c.h.bf16 %v742_v25 }
  0x1b   :  { %v387_v48 = vmax.f32 %v355_v39, %v321_v14  ;;  %v133_v49 = vadd.f32 %v811_v8, %v95_v42  ;;  %v262_v50 = vmul.f32 %v696_v43, %v794_v1  ;;  %v356_v52 = vmax.f32 %v164_v41, %v324_v45 }
  0x1c   :  { %434 = vst [vmem:[#allocation2 + $0x50] sm:$0xff] %v386_v44  ;;  %v293_v53 = vadd.f32 %v811_v8, %v261_v46  ;;  %v134_v54 = vadd.f32 %v811_v8, %v96_v40  ;;  %v697_v55 = vunpack.c.h.bf16 %v758_v30  ;;  %v97_v59 = vmul.f32 %v633_v51, %v794_v1  ;;  %v746_v51 = vld [vmem:[%s1096_s0 + $0x90] sm:$0xff]  }
  0x1d   :  { %435 = vst [vmem:[#allocation2 + $0x58] sm:$0xff] %v387_v48  ;;  %v165_v57 = vmax.f32 %v133_v49, 0.0  ;;  %v294_v58 = vadd.f32 %v811_v8, %v262_v50  ;;  %v636_v60 = vunpack.c.l.bf16 %v743_v47  ;;  %v388_v61 = vmax.f32 %v356_v52, %v322_v27 }
  0x1e   :  { %v325_v62 = vmax.f32 %v293_v53, 0.0  ;;  %v166_v63 = vmax.f32 %v134_v54, 0.0  ;;  %v263_v0 = vmul.f32 %v697_v55, %v794_v1  ;;  %v135_v3 = vadd.f32 %v811_v8, %v97_v59 }
  0x1f   :  { %v326_v2 = vmax.f32 %v294_v58, 0.0  ;;  %v98_v4 = vmul.f32 %v636_v60, %v794_v1  ;;  %v700_v5 = vunpack.c.l.bf16 %v759_v56  ;;  %436 = vst [vmem:[#allocation2 + $0x68] sm:$0xff] %v388_v61  ;;  %v637_v9 = vunpack.c.h.bf16 %v743_v47 }
  0x20   :  { %v357_v6 = vmax.f32 %v165_v57, %v325_v62  ;;  %v295_v7 = vadd.f32 %v811_v8, %v263_v0  ;;  %v701_v10 = vunpack.c.h.bf16 %v759_v56  ;;  %v167_v13 = vmax.f32 %v135_v3, 0.0  ;;  %v762_v56 = vld [vmem:[%s1096_s0 + $0x98] sm:$0xff]  }
  0x21   :  { %v358_v12 = vmax.f32 %v166_v63, %v326_v2  ;;  %v136_v14 = vadd.f32 %v811_v8, %v98_v4  ;;  %v264_v15 = vmul.f32 %v700_v5, %v794_v1  ;;  %v99_v19 = vmul.f32 %v637_v9, %v794_v1 }
  0x22   :  { %v389_v17 = vmax.f32 %v357_v6, %v323_v32  ;;  %v327_v18 = vmax.f32 %v295_v7, 0.0  ;;  %v265_v20 = vmul.f32 %v701_v10, %v794_v1  ;;  %v640_v24 = vunpack.c.l.bf16 %v744_v11 }
  0x23   :  { %v390_v21 = vmax.f32 %v358_v12, %v324_v45  ;;  %v168_v22 = vmax.f32 %v136_v14, 0.0  ;;  %v296_v23 = vadd.f32 %v811_v8, %v264_v15  ;;  %v137_v26 = vadd.f32 %v811_v8, %v99_v19 }
  0x24   :  { %437 = vst [vmem:[#allocation2 + $0x70] sm:$0xff] %v389_v17  ;;  %v359_v25 = vmax.f32 %v167_v13, %v327_v18  ;;  %v297_v27 = vadd.f32 %v811_v8, %v265_v20  ;;  %v704_v28 = vunpack.c.l.bf16 %v760_v16  ;;  %v100_v30 = vmul.f32 %v640_v24, %v794_v1  ;;  %v763_v20 = vld [vmem:[%s1096_s0 + $0xa8] sm:$0xff]  }
  0x25   :  { %438 = vst [vmem:[#allocation2 + $0x80] sm:$0xff] %v390_v21  ;;  %v328_v29 = vmax.f32 %v296_v23, 0.0  ;;  %v641_v31 = vunpack.c.h.bf16 %v744_v11  ;;  %v705_v32 = vunpack.c.h.bf16 %v760_v16  ;;  %v169_v36 = vmax.f32 %v137_v26, 0.0  ;;  %v747_v11 = vld [vmem:[%s1096_s0 + $0xa0] sm:$0xff]  }
  0x26   :  { %v391_v35 = vmax.f32 %v359_v25, %v325_v62  ;;  %v329_v37 = vmax.f32 %v297_v27, 0.0  ;;  %v266_v38 = vmul.f32 %v704_v28, %v794_v1  ;;  %v138_v41 = vadd.f32 %v811_v8, %v100_v30 }
  0x27   :  { %v360_v39 = vmax.f32 %v168_v22, %v328_v29  ;;  %v101_v42 = vmul.f32 %v641_v31, %v794_v1  ;;  %v267_v43 = vmul.f32 %v705_v32, %v794_v1  ;;  %v644_v46 = vunpack.c.l.bf16 %v745_v33 }
  0x28   :  { %439 = vst [vmem:[#allocation2 + $0x88] sm:$0xff] %v391_v35  ;;  %v361_v44 = vmax.f32 %v169_v36, %v329_v37  ;;  %v298_v45 = vadd.f32 %v811_v8, %v266_v38  ;;  %v708_v40 = vunpack.c.l.bf16 %v761_v34  ;;  %v170_v48 = vmax.f32 %v138_v41, 0.0 }
  0x29   :  { %v392_v47 = vmax.f32 %v360_v39, %v326_v2  ;;  %v139_v49 = vadd.f32 %v811_v8, %v101_v42  ;;  %v299_v50 = vadd.f32 %v811_v8, %v267_v43  ;;  %v102_v54 = vmul.f32 %v644_v46, %v794_v1  ;;  %v764_v43 = vld [vmem:[%s1096_s0 + $0xb8] sm:$0xff]  }
  0x2a   :  { %v393_v52 = vmax.f32 %v361_v44, %v327_v18  ;;  %v330_v53 = vmax.f32 %v298_v45, 0.0  ;;  %v268_v55 = vmul.f32 %v708_v40, %v794_v1  ;;  %v645_v59 = vunpack.c.h.bf16 %v745_v33 }
  0x2b   :  { %440 = vst [vmem:[#allocation2 + $0x98] sm:$0xff] %v392_v47  ;;  %v171_v57 = vmax.f32 %v139_v49, 0.0  ;;  %v331_v58 = vmax.f32 %v299_v50, 0.0  ;;  %v709_v60 = vunpack.c.h.bf16 %v761_v34  ;;  %v140_v62 = vadd.f32 %v811_v8, %v102_v54 }
  0x2c   :  { %441 = vst [vmem:[#allocation2 + $0xa0] sm:$0xff] %v393_v52  ;;  %v362_v61 = vmax.f32 %v170_v48, %v330_v53  ;;  %v300_v63 = vadd.f32 %v811_v8, %v268_v55  ;;  %v648_v0 = vunpack.c.l.bf16 %v746_v51  ;;  %v103_v3 = vmul.f32 %v645_v59, %v794_v1  ;;  %v749_v59 = vld [vmem:[%s1096_s0 + $0xc0] sm:$0xff]  }
  0x2d   :  { %v363_v2 = vmax.f32 %v171_v57, %v331_v58  ;;  %v269_v4 = vmul.f32 %v709_v60, %v794_v1  ;;  %v712_v5 = vunpack.c.l.bf16 %v762_v56  ;;  %v172_v7 = vmax.f32 %v140_v62, 0.0  ;;  %v765_v60 = vld [vmem:[%s1096_s0 + $0xc8] sm:$0xff]  }
  0x2e   :  { %v394_v6 = vmax.f32 %v362_v61, %v328_v29  ;;  %v332_v9 = vmax.f32 %v300_v63, 0.0  ;;  %v104_v10 = vmul.f32 %v648_v0, %v794_v1  ;;  %v141_v13 = vadd.f32 %v811_v8, %v103_v3 }
  0x2f   :  { %v395_v12 = vmax.f32 %v363_v2, %v329_v37  ;;  %v301_v14 = vadd.f32 %v811_v8, %v269_v4  ;;  %v270_v15 = vmul.f32 %v712_v5, %v794_v1  ;;  %v649_v18 = vunpack.c.h.bf16 %v746_v51  ;;  %v748_v37 = vld [vmem:[%s1096_s0 + $0xb0] sm:$0xff]  }
  0x30   :  { %442 = vst [vmem:[#allocation2 + $0xb0] sm:$0xff] %v394_v6  ;;  %v364_v16 = vmax.f32 %v172_v7, %v332_v9  ;;  %v142_v17 = vadd.f32 %v811_v8, %v104_v10  ;;  %v713_v19 = vunpack.c.h.bf16 %v762_v56  ;;  %v173_v21 = vmax.f32 %v141_v13, 0.0 }
  0x31   :  { %443 = vst [vmem:[#allocation2 + $0xb8] sm:$0xff] %v395_v12  ;;  %v333_v22 = vmax.f32 %v301_v14, 0.0  ;;  %v302_v23 = vadd.f32 %v811_v8, %v270_v15  ;;  %v652_v24 = vunpack.c.l.bf16 %v747_v11  ;;  %v105_v27 = vmul.f32 %v649_v18, %v794_v1  ;;  %v750_v15 = vld [vmem:[%s1096_s0 + $0xd0] sm:$0xff]  }
  0x32   :  { %v396_v25 = vmax.f32 %v364_v16, 0.0  ;;  %v174_v26 = vmax.f32 %v142_v17, 0.0  ;;  %v271_v28 = vmul.f32 %v713_v19, %v794_v1  ;;  %v716_v32 = vunpack.c.l.bf16 %v763_v20 }
  0x33   :  { %v365_v29 = vmax.f32 %v173_v21, %v333_v22  ;;  %v334_v30 = vmax.f32 %v302_v23, 0.0  ;;  %v106_v31 = vmul.f32 %v652_v24, %v794_v1  ;;  %v143_v33 = vadd.f32 %v811_v8, %v105_v27 }
  0x34   :  { %444 = vst [vmem:[#allocation2 + $0xc8] sm:$0xff] %v396_v25  ;;  %v303_v34 = vadd.f32 %v811_v8, %v271_v28  ;;  %v653_v35 = vunpack.c.h.bf16 %v747_v11  ;;  %v717_v36 = vunpack.c.h.bf16 %v763_v20  ;;  %v272_v42 = vmul.f32 %v716_v32, %v794_v1  ;;  %v766_v20 = vld [vmem:[%s1096_s0 + $0xd8] sm:$0xff]  }
  0x35   :  { %v397_v38 = vmax.f32 %v365_v29, 0.0  ;;  %v366_v39 = vmax.f32 %v174_v26, %v334_v30  ;;  %v144_v41 = vadd.f32 %v811_v8, %v106_v31  ;;  %v175_v44 = vmax.f32 %v143_v33, 0.0 }
  0x36   :  { %v335_v45 = vmax.f32 %v303_v34, 0.0  ;;  %v107_v46 = vmul.f32 %v653_v35, %v794_v1  ;;  %v273_v40 = vmul.f32 %v717_v36, %v794_v1  ;;  %v304_v49 = vadd.f32 %v811_v8, %v272_v42 }
  0x37   :  { %445 = vst [vmem:[#allocation2 + $0xd0] sm:$0xff] %v397_v38  ;;  %v398_v47 = vmax.f32 %v366_v39, %v332_v9  ;;  %v176_v48 = vmax.f32 %v144_v41, 0.0  ;;  %v656_v50 = vunpack.c.l.bf16 %v748_v37  ;;  %v720_v54 = vunpack.c.l.bf16 %v764_v43 }
  0x38   :  { %v367_v51 = vmax.f32 %v175_v44, %v335_v45  ;;  %v145_v52 = vadd.f32 %v811_v8, %v107_v46  ;;  %v305_v53 = vadd.f32 %v811_v8, %v273_v40  ;;  %v336_v55 = vmax.f32 %v304_v49, 0.0  ;;  %v767_v40 = vld [vmem:[%s1096_s0 + $0xe8] sm:$0xff]  }
  0x39   :  { %446 = vst [vmem:[#allocation2 + $0xe0] sm:$0xff] %v398_v47  ;;  %v108_v56 = vmul.f32 %v656_v50, %v794_v1  ;;  %v657_v57 = vunpack.c.h.bf16 %v748_v37  ;;  %v721_v58 = vunpack.c.h.bf16 %v764_v43  ;;  %v274_v0 = vmul.f32 %v720_v54, %v794_v1  ;;  %v751_v37 = vld [vmem:[%s1096_s0 + $0xe0] sm:$0xff]  }
  0x3a   :  { %v399_v61 = vmax.f32 %v367_v51, %v333_v22  ;;  %v177_v62 = vmax.f32 %v145_v52, 0.0  ;;  %v337_v63 = vmax.f32 %v305_v53, 0.0  ;;  %v368_v2 = vmax.f32 %v176_v48, %v336_v55 }
  0x3b   :  { %v146_v3 = vadd.f32 %v811_v8, %v108_v56  ;;  %v109_v4 = vmul.f32 %v657_v57, %v794_v1  ;;  %v275_v5 = vmul.f32 %v721_v58, %v794_v1  ;;  %v306_v7 = vadd.f32 %v811_v8, %v274_v0 }
  0x3c   :  { %447 = vst [vmem:[#allocation2 + $0xe8] sm:$0xff] %v399_v61  ;;  %v369_v6 = vmax.f32 %v177_v62, %v337_v63  ;;  %v660_v9 = vunpack.c.l.bf16 %v749_v59  ;;  %v724_v10 = vunpack.c.l.bf16 %v765_v60  ;;  %v400_v11 = vmax.f32 %v368_v2, %v334_v30 }
  0x3d   :  { %v178_v12 = vmax.f32 %v146_v3, 0.0  ;;  %v147_v13 = vadd.f32 %v811_v8, %v109_v4  ;;  %v307_v14 = vadd.f32 %v811_v8, %v275_v5  ;;  %v338_v17 = vmax.f32 %v306_v7, 0.0  ;;  %v768_v5 = vld [vmem:[%s1096_s0 + $0xf8] sm:$0xff]  }
  0x3e   :  { %v401_v16 = vmax.f32 %v369_v6, %v335_v45  ;;  %v110_v18 = vmul.f32 %v660_v9, %v794_v1  ;;  %v276_v19 = vmul.f32 %v724_v10, %v794_v1  ;;  %448 = vst [vmem:[#allocation2 + $0xf8] sm:$0xff] %v400_v11  ;;  %v661_v23 = vunpack.c.h.bf16 %v749_v59 }
  0x3f   :  { %v179_v21 = vmax.f32 %v147_v13, 0.0  ;;  %v339_v22 = vmax.f32 %v307_v14, 0.0  ;;  %v725_v24 = vunpack.c.h.bf16 %v765_v60  ;;  %v370_v25 = vmax.f32 %v178_v12, %v338_v17 }
  0x40   :  { %449 = vst [vmem:[#allocation2 + $0x100] sm:$0xff] %v401_v16  ;;  %v148_v26 = vadd.f32 %v811_v8, %v110_v18  ;;  %v308_v27 = vadd.f32 %v811_v8, %v276_v19  ;;  %v664_v28 = vunpack.c.l.bf16 %v750_v15  ;;  %v111_v30 = vmul.f32 %v661_v23, %v794_v1  ;;  %v461_v19 = vld [vmem:[#allocation2 + $0x7] ss:$2 sm:$0xff] }
  0x41   :  { %v371_v29 = vmax.f32 %v179_v21, %v339_v22  ;;  %v277_v31 = vmul.f32 %v725_v24, %v794_v1  ;;  %v728_v32 = vunpack.c.l.bf16 %v766_v20  ;;  %v402_v33 = vmax.f32 %v370_v25, %v336_v55  ;;  %v463_v25 = vld [vmem:[#allocation2 + $0x1f] ss:$2 sm:$0xff] }
  0x42   :  { %v180_v34 = vmax.f32 %v148_v26, 0.0  ;;  %v340_v35 = vmax.f32 %v308_v27, 0.0  ;;  %v112_v36 = vmul.f32 %v664_v28, %v794_v1  ;;  %v149_v39 = vadd.f32 %v811_v8, %v111_v30  ;;  %v495_v26 = vld [vmem:[#allocation2 + $0x20] ss:$2 sm:$0xff] }
  0x43   :  { %v403_v38 = vmax.f32 %v371_v29, %v337_v63  ;;  %v309_v41 = vadd.f32 %v811_v8, %v277_v31  ;;  %v278_v42 = vmul.f32 %v728_v32, %v794_v1  ;;  %450 = vst [vmem:[#allocation2 + $0x110] sm:$0xff] %v402_v33  ;;  %v665_v45 = vunpack.c.h.bf16 %v750_v15  ;;  %v752_v63 = vld [vmem:[%s1096_s0 + $0xf0] sm:$0xff]   ;;  %v497_v32 = vld [vmem:[#allocation2 + $0x38] ss:$2 sm:$0xff] }
  0x44   :  { %v372_v43 = vmax.f32 %v180_v34, %v340_v35  ;;  %v150_v44 = vadd.f32 %v811_v8, %v112_v36  ;;  %v729_v46 = vunpack.c.h.bf16 %v766_v20  ;;  %v181_v47 = vmax.f32 %v149_v39, 0.0  ;;  %v493_v20 = vld [vmem:[#allocation2 + $0x8] ss:$2 sm:$0xff]  ;;  %v465_v31 = vld [vmem:[#allocation2 + $0x37] ss:$2 sm:$0xff] }
  0x45   :  { %451 = vst [vmem:[#allocation2 + $0x118] sm:$0xff] %v403_v38  ;;  %v341_v48 = vmax.f32 %v309_v41, 0.0  ;;  %v1002_v49 = vadd.f32 %v811_v8, %v278_v42  ;;  %v668_v50 = vunpack.c.l.bf16 %v751_v37  ;;  %v113_v53 = vmul.f32 %v665_v45, %v794_v1  ;;  %v467_v33 = vld [vmem:[#allocation2 + $0x4f] ss:$2 sm:$0xff]  ;;  %v499_v34 = vld [vmem:[#allocation2 + $0x50] ss:$2 sm:$0xff] }
  0x46   :  { %v404_v51 = vmax.f32 %v372_v43, %v338_v17  ;;  %v182_v52 = vmax.f32 %v150_v44, 0.0  ;;  %v279_v54 = vmul.f32 %v729_v46, %v794_v1  ;;  %v732_v58 = vunpack.c.l.bf16 %v767_v40  ;;  %v541_v39 = vld [vmem:[#allocation2 + $0x9] ss:$2 sm:$0xff]  ;;  %v501_v43 = vld [vmem:[#allocation2 + $0x68] ss:$2 sm:$0xff] }
  0x47   :  { %v373_v55 = vmax.f32 %v181_v47, %v341_v48  ;;  %v342_v56 = vmax.f32 %v1002_v49, 0.0  ;;  %v114_v57 = vmul.f32 %v668_v50, %v794_v1  ;;  %v151_v59 = vadd.f32 %v811_v8, %v113_v53  ;;  %v543_v41 = vld [vmem:[#allocation2 + $0x21] ss:$2 sm:$0xff]  ;;  %v505_v50 = vld [vmem:[#allocation2 + $0x98] ss:$2 sm:$0xff] }
  0x48   :  { %452 = vst [vmem:[#allocation2 + $0x128] sm:$0xff] %v404_v51  ;;  %v1010_v60 = vadd.f32 %v811_v8, %v279_v54  ;;  %v669_v61 = vunpack.c.h.bf16 %v751_v37  ;;  %v733_v62 = vunpack.c.h.bf16 %v767_v40  ;;  %v280_v4 = vmul.f32 %v732_v58, %v794_v1  ;;  %v469_v42 = vld [vmem:[#allocation2 + $0x67] ss:$2 sm:$0xff]  ;;  %v473_v49 = vld [vmem:[#allocation2 + $0x97] ss:$2 sm:$0xff] }
  0x49   :  { %v405_v0 = vmax.f32 %v373_v55, %v339_v22  ;;  %v374_v2 = vmax.f32 %v182_v52, %v342_v56  ;;  %v152_v3 = vadd.f32 %v811_v8, %v114_v57  ;;  %v183_v6 = vmax.f32 %v151_v59, 0.0  ;;  %v471_v44 = vld [vmem:[#allocation2 + $0x7f] ss:$2 sm:$0xff]  ;;  %v475_v54 = vld [vmem:[#allocation2 + $0xaf] ss:$2 sm:$0xff] }
  0x4a   :  { %v343_v7 = vmax.f32 %v1010_v60, 0.0  ;;  %v115_v9 = vmul.f32 %v669_v61, %v794_v1  ;;  %v281_v10 = vmul.f32 %v733_v62, %v794_v1  ;;  %v1024_v13 = vadd.f32 %v811_v8, %v280_v4  ;;  %v507_v55 = vld [vmem:[#allocation2 + $0xb0] ss:$2 sm:$0xff]  ;;  %v545_v61 = vld [vmem:[#allocation2 + $0x39] ss:$2 sm:$0xff] }
  0x4b   :  { %453 = vst [vmem:[#allocation2 + $0x130] sm:$0xff] %v405_v0  ;;  %v406_v11 = vmax.f32 %v374_v2, %v340_v35  ;;  %v184_v12 = vmax.f32 %v152_v3, 0.0  ;;  %v672_v14 = vunpack.c.l.bf16 %v752_v63  ;;  %v736_v18 = vunpack.c.l.bf16 %v768_v5  ;;  %v547_v62 = vld [vmem:[#allocation2 + $0x51] ss:$2 sm:$0xff]  ;;  %v509_v0 = vld [vmem:[#allocation2 + $0xc8] ss:$2 sm:$0xff] }
  0x4c   :  { %v375_v15 = vmax.f32 %v183_v6, %v343_v7  ;;  %v153_v16 = vadd.f32 %v811_v8, %v115_v9  ;;  %v1028_v17 = vadd.f32 %v811_v8, %v281_v10  ;;  %v344_v21 = vmax.f32 %v1024_v13, 0.0  ;;  %v551_v6 = vld [vmem:[#allocation2 + $0x81] ss:$2 sm:$0xff] }
  0x4d   :  { %454 = vst [vmem:[#allocation2 + $0x140] sm:$0xff] %v406_v11  ;;  %v116_v22 = vmul.f32 %v672_v14, %v794_v1  ;;  %v673_v23 = vunpack.c.h.bf16 %v752_v63  ;;  %v737_v24 = vunpack.c.h.bf16 %v768_v5  ;;  %v282_v30 = vmul.f32 %v736_v18, %v794_v1  ;;  %v477_v63 = vld [vmem:[#allocation2 + $0xc7] ss:$2 sm:$0xff] }
  0x4e   :  { %v407_v27 = vmax.f32 %v375_v15, %v341_v48  ;;  %v185_v28 = vmax.f32 %v153_v16, 0.0  ;;  %v345_v29 = vmax.f32 %v1028_v17, 0.0  ;;  %v376_v35 = vmax.f32 %v184_v12, %v344_v21  ;;  %v503_v48 = vld [vmem:[#allocation2 + $0x80] ss:$2 sm:$0xff]  ;;  %v549_v5 = vld [vmem:[#allocation2 + $0x69] ss:$2 sm:$0xff] }
  0x4f   :  { %v154_v36 = vadd.f32 %v811_v8, %v116_v22  ;;  %v117_v37 = vmul.f32 %v673_v23, %v794_v1  ;;  %v283_v38 = vmul.f32 %v737_v24, %v794_v1  ;;  %v314_v46 = vadd.f32 %v811_v8, %v282_v30  ;;  %v553_v9 = vld [vmem:[#allocation2 + $0x99] ss:$2 sm:$0xff]  ;;  %v513_v16 = vld [vmem:[#allocation2 + $0xf8] ss:$2 sm:$0xff]  ;;  %v557_v17 = vld [vmem:[#allocation2 + $0xc9] ss:$2 sm:$0xff] }
  0x50   :  { %455 = vst [vmem:[#allocation2 + $0x148] sm:$0xff] %v407_v27  ;;  %v377_v45 = vmax.f32 %v185_v28, %v345_v29  ;;  %v524_v40 = vmax.f32 %v461_v19, %v493_v20  ;;  %v525_v47 = vmax.f32 %v463_v25, %v495_v26  ;;  %v408_v51 = vmax.f32 %v376_v35, %v342_v56  ;;  %v479_v10 = vld [vmem:[#allocation2 + $0xdf] ss:$2 sm:$0xff]  ;;  %v483_v18 = vld [vmem:[#allocation2 + $0x10f] ss:$2 sm:$0xff] }
  0x51   :  { %v186_v52 = vmax.f32 %v154_v36, 0.0  ;;  %v155_v1 = vadd.f32 %v811_v8, %v117_v37  ;;  %v315_v53 = vadd.f32 %v811_v8, %v283_v38  ;;  %v346_v58 = vmax.f32 %v314_v46, 0.0  ;;  %v511_v8 = vld [vmem:[#allocation2 + $0xe0] ss:$2 sm:$0xff]  ;;  %v481_v15 = vld [vmem:[#allocation2 + $0xf7] ss:$2 sm:$0xff] }
  0x52   :  { %v409_v57 = vmax.f32 %v377_v45, %v343_v7  ;;  %v572_v59 = vmax.f32 %v524_v40, %v541_v39  ;;  %v573_v60 = vmax.f32 %v525_v47, %v543_v41  ;;  %456 = vst [vmem:[#allocation2 + $0x158] sm:$0xff] %v408_v51  ;;  %v526_v4 = vmax.f32 %v465_v31, %v497_v32  ;;  %v515_v24 = vld [vmem:[#allocation2 + $0x110] ss:$2 sm:$0xff]  ;;  %v485_v25 = vld [vmem:[#allocation2 + $0x127] ss:$2 sm:$0xff] }
  0x53   :  { %v187_v2 = vmax.f32 %v155_v1, 0.0  ;;  %v347_v3 = vmax.f32 %v315_v53, 0.0  ;;  %v527_v56 = vmax.f32 %v467_v33, %v499_v34  ;;  %v378_v11 = vmax.f32 %v186_v52, %v346_v58  ;;  %v517_v26 = vld [vmem:[#allocation2 + $0x128] ss:$2 sm:$0xff]  ;;  %v555_v32 = vld [vmem:[#allocation2 + $0xb1] ss:$2 sm:$0xff] }
  0x54   :  { %457 = vst [vmem:[#allocation2 + $0x160] sm:$0xff] %v409_v57  ;;  %588 = vst [vmem:[%s1099_s3] sm:$0xff] %v572_v59  ;;  %v528_v7 = vmax.f32 %v469_v42, %v501_v43  ;;  %v529_v12 = vmax.f32 %v471_v44, %v503_v48  ;;  %v530_v14 = vmax.f32 %v473_v49, %v505_v50  ;;  %v561_v38 = vld [vmem:[#allocation2 + $0xf9] ss:$2 sm:$0xff]  ;;  %v565_v46 = vld [vmem:[#allocation2 + $0x129] ss:$2 sm:$0xff] }
  0x55   :  { %589 = vst [vmem:[%s1099_s3 + $0x8] sm:$0xff] %v573_v60  ;;  %v379_v19 = vmax.f32 %v187_v2, %v347_v3  ;;  %v574_v20 = vmax.f32 %v526_v4, %v545_v61  ;;  %v575_v22 = vmax.f32 %v527_v56, %v547_v62  ;;  %v531_v23 = vmax.f32 %v475_v54, %v507_v55  ;;  %v563_v45 = vld [vmem:[#allocation2 + $0x111] ss:$2 sm:$0xff] }
  0x56   :  { %v410_v27 = vmax.f32 %v378_v11, %v344_v21  ;;  %v576_v28 = vmax.f32 %v528_v7, %v549_v5  ;;  %v577_v30 = vmax.f32 %v529_v12, %v551_v6  ;;  %v578_v31 = vmax.f32 %v530_v14, %v553_v9 }
  0x57   :  { %v411_v33 = vmax.f32 %v379_v19, %v345_v29  ;;  %590 = vst [vmem:[%s1099_s3 + $0x10] sm:$0xff] %v574_v20  ;;  %591 = vst [vmem:[%s1099_s3 + $0x18] sm:$0xff] %v575_v22  ;;  %v579_v34 = vmax.f32 %v531_v23, %v555_v32  ;;  %v532_v35 = vmax.f32 %v477_v63, %v509_v0  ;;  %v487_v13 = vld [vmem:[#allocation2 + $0x13f] ss:$2 sm:$0xff]  ;;  %v519_v21 = vld [vmem:[#allocation2 + $0x140] ss:$2 sm:$0xff] }
  0x58   :  { %v533_v36 = vmax.f32 %v479_v10, %v511_v8  ;;  %458 = vst [vmem:[#allocation2 + $0x170] sm:$0xff] %v410_v27  ;;  %592 = vst [vmem:[%s1099_s3 + $0x20] sm:$0xff] %v576_v28  ;;  %v559_v29 = vld [vmem:[#allocation2 + $0xe1] ss:$2 sm:$0xff]  ;;  %v534_v37 = vmax.f32 %v481_v15, %v513_v16  ;;  %v535_v39 = vmax.f32 %v483_v18, %v515_v24 }
  0x59   :  { %593 = vst [vmem:[%s1099_s3 + $0x28] sm:$0xff] %v577_v30  ;;  %594 = vst [vmem:[%s1099_s3 + $0x30] sm:$0xff] %v578_v31  ;;  %v536_v41 = vmax.f32 %v485_v25, %v517_v26  ;;  %v537_v42 = vmax.f32 %v487_v13, %v519_v21  ;;  %v580_v43 = vmax.f32 %v532_v35, %v557_v17  ;;  %v567_v40 = vld [vmem:[#allocation2 + $0x141] ss:$2 sm:$0xff] }
  0x5a   :  { %459 = vst [vmem:[#allocation2 + $0x178] sm:$0xff] %v411_v33  ;;  %595 = vst [vmem:[%s1099_s3 + $0x38] sm:$0xff] %v579_v34  ;;  %v581_v44 = vmax.f32 %v533_v36, %v559_v29  ;;  %v582_v47 = vmax.f32 %v534_v37, %v561_v38  ;;  %v583_v48 = vmax.f32 %v535_v39, %v563_v45 }
  0x5b   :  { %v584_v49 = vmax.f32 %v536_v41, %v565_v46  ;;  %v585_v50 = vmax.f32 %v537_v42, %v567_v40  ;;  %596 = vst [vmem:[%s1099_s3 + $0x40] sm:$0xff] %v580_v43  ;;  %v489_v51 = vld [vmem:[#allocation2 + $0x157] ss:$2 sm:$0xff]  ;;  %v521_v52 = vld [vmem:[#allocation2 + $0x158] ss:$2 sm:$0xff] }
  0x5c   :  { %597 = vst [vmem:[%s1099_s3 + $0x48] sm:$0xff] %v581_v44  ;;  %598 = vst [vmem:[%s1099_s3 + $0x50] sm:$0xff] %v582_v47  ;;  %v538_v1 = vmax.f32 %v489_v51, %v521_v52  ;;  %v569_v53 = vld [vmem:[#allocation2 + $0x159] ss:$2 sm:$0xff] }
  0x5d   :  { %599 = vst [vmem:[%s1099_s3 + $0x58] sm:$0xff] %v583_v48  ;;  %600 = vst [vmem:[%s1099_s3 + $0x60] sm:$0xff] %v584_v49 }
  0x5e   :  { %601 = vst [vmem:[%s1099_s3 + $0x68] sm:$0xff] %v585_v50  ;;  %v586_v54 = vmax.f32 %v538_v1, %v569_v53 }
  0x60   :  { %602 = vst [vmem:[%s1099_s3 + $0x70] sm:$0xff] %v586_v54 }
  0x61   :  { %v491_v55 = vld [vmem:[#allocation2 + $0x16f] ss:$2 sm:$0xff]  ;;  %v523_v57 = vld [vmem:[#allocation2 + $0x170] ss:$2 sm:$0xff] }
  0x62   :  { %v539_v58 = vmax.f32 %v491_v55, %v523_v57  ;;  %v571_v59 = vld [vmem:[#allocation2 + $0x171] ss:$2 sm:$0xff] }
  0x64   :  { %v587_v60 = vmax.f32 %v539_v58, %v571_v59 }
  0x66   :  { %603 = vst [vmem:[%s1099_s3 + $0x78] sm:$0xff] %v587_v60 }

// kernel: dynconv_forward.2
= control target key start
LH: loop header
LB: loop body
LE: loop exit
PB: predicated region body
PF: predicated region fallthrough
CT: control target
= control target key end

     0   :  { %vm350_vm0 = vcmask 1044480   ;;  %vm351_vm1 = vcmask 1045504   ;;  %v1704_v1 = vmov 65535   ;;  %vm253_vm2 = vcmask 220160   ;;  %s2153_s1 = inlined_call_operand.vmem [shape: bf16[27,128], index: 1, kind: input, shape index: {}]   ;;  %s2154_s0 = inlined_call_operand.vmem [shape: bf16[512,27], index: 0, kind: input, shape index: {}]   ;;  %s2155_s2 = inlined_call_operand.vmem [shape: bf16[512,128], index: 2, kind: output, shape index: {0}]   ;;  %s2156_s3 = inlined_call_operand.vmem [shape: f32[1,2,128], index: 3, kind: output, shape index: {1}]  }
   0x1   :  { %v1670_v0 = vld [vmem:[%s2153_s1 + $0x8] sm:$0x3f]   ;;  %v352_v2 = vsel %vm350_vm0, 4294967295, %v1704_v1  ;;  %v1672_v4 = vld [vmem:[%s2154_s0] sm:$0xff]   ;;  %v1674_v8 = vld [vmem:[%s2154_s0 + $0x10] sm:$0xff]  }
   0x2   :  { %v353_v3 = vsel %vm351_vm1, %v352_v2, 0  ;;  %v1671_v6 = vld [vmem:[%s2153_s1] sm:$0xff]   ;;  %1601 = vmatprep.mubr.msk.bf16.mxu0 %vm253_vm2, %v1672_v4  ;;  %v1673_v7 = vld [vmem:[%s2154_s0 + $0x8] sm:$0xff]   ;;  %v1675_v9 = vld [vmem:[%s2154_s0 + $0x18] sm:$0xff]  }
   0x3   :  { %v355_v5 = vand.u32 %v1670_v0, %v353_v3  ;;  %v1676_v10 = vld [vmem:[%s2154_s0 + $0x20] sm:$0xff]   ;;  %v1689_v12 = vld [vmem:[%s2154_s0 + $0x88] sm:$0xff]   ;;  %v1690_v13 = vld [vmem:[%s2154_s0 + $0x90] sm:$0xff]  }
   0x4   :  { %v1688_v11 = vld [vmem:[%s2154_s0 + $0x80] sm:$0xff]   ;;  %v1677_v14 = vld [vmem:[%s2154_s0 + $0x28] sm:$0xff]   ;;  %v1678_v15 = vld [vmem:[%s2154_s0 + $0x30] sm:$0xff]  }
   0x5   :  { %1597 = vmatprep.subr.bf16.mxu0 %v355_v5  ;;  %1665 = vmatprep.subr.bf16.mxu1 %v355_v5  ;;  %v1691_v16 = vld [vmem:[%s2154_s0 + $0x98] sm:$0xff]   ;;  %v1692_v17 = vld [vmem:[%s2154_s0 + $0xa0] sm:$0xff]   ;;  %v1693_v19 = vld [vmem:[%s2154_s0 + $0xa8] sm:$0xff]  }
   0x6   :  { %1598 = vmatpush3.bf16.msra.mxu0 %v355_v5  ;;  %1667 = vmatpush3.bf16.msra.mxu1 %v355_v5  ;;  %v1679_v18 = vld [vmem:[%s2154_s0 + $0x38] sm:$0xff]   ;;  %v1680_v20 = vld [vmem:[%s2154_s0 + $0x40] sm:$0xff]   ;;  %v1694_v21 = vld [vmem:[%s2154_s0 + $0xb0] sm:$0xff]  }
   0x7   :  { %1599 = vmatprep.subr.bf16.mxu0 %v1671_v6  ;;  %1666 = vmatprep.subr.bf16.mxu1 %v1671_v6  ;;  %v1681_v22 = vld [vmem:[%s2154_s0 + $0x48] sm:$0xff]   ;;  %v1695_v23 = vld [vmem:[%s2154_s0 + $0xb8] sm:$0xff]   ;;  %v1682_v24 = vld [vmem:[%s2154_s0 + $0x50] sm:$0xff]  }
   0x8   :  { %1633 = vmatprep.mubr.msk.bf16.mxu1 %vm253_vm2, %v1688_v11  ;;  %v1696_v25 = vld [vmem:[%s2154_s0 + $0xc0] sm:$0xff]   ;;  %v1683_v26 = vld [vmem:[%s2154_s0 + $0x58] sm:$0xff]   ;;  %v1697_v27 = vld [vmem:[%s2154_s0 + $0xc8] sm:$0xff]  }
   0x9   :  { %v1684_v28 = vld [vmem:[%s2154_s0 + $0x60] sm:$0xff]   ;;  %v1698_v29 = vld [vmem:[%s2154_s0 + $0xd0] sm:$0xff]   ;;  %v1685_v30 = vld [vmem:[%s2154_s0 + $0x68] sm:$0xff]  }
   0xa   :  { %1600 = vmatpush3.bf16.msra.mxu0 %v1671_v6  ;;  %1668 = vmatpush3.bf16.msra.mxu1 %v1671_v6  ;;  %v1699_v31 = vld [vmem:[%s2154_s0 + $0xd8] sm:$0xff]   ;;  %v1686_v32 = vld [vmem:[%s2154_s0 + $0x70] sm:$0xff]   ;;  %v1700_v33 = vld [vmem:[%s2154_s0 + $0xe0] sm:$0xff]  }
   0xb   :  { %v1687_v34 = vld [vmem:[%s2154_s0 + $0x78] sm:$0xff]   ;;  %v1701_v35 = vld [vmem:[%s2154_s0 + $0xe8] sm:$0xff]   ;;  %v1702_v36 = vld [vmem:[%s2154_s0 + $0xf0] sm:$0xff]  }
   0xc   :  { %v1703_v37 = vld [vmem:[%s2154_s0 + $0xf8] sm:$0xff]  }
   0xd   :  { %1602 = vmatmul.mubr.msk.bf16.vlgmr.msra.gmra.mxu0 %vm253_vm2, %v1673_v7  ;;  %1634 = vmatmul.mubr.msk.bf16.vlgmr.msra.gmra.mxu1 %vm253_vm2, %v1689_v12 }
   0xe   :  { %1605 = vmatprep.mubr.msk.bf16.mxu0 %vm253_vm2, %v1674_v8  ;;  %1637 = vmatprep.mubr.msk.bf16.mxu1 %vm253_vm2, %v1690_v13 }
  0x15   :  { %1606 = vmatmul.mubr.msk.bf16.gmra.mxu0 %vm253_vm2, %v1675_v9  ;;  %1638 = vmatmul.mubr.msk.bf16.gmra.mxu1 %vm253_vm2, %v1691_v16 }
  0x16   :  { %1609 = vmatprep.mubr.msk.bf16.mxu0 %vm253_vm2, %v1676_v10  ;;  %1641 = vmatprep.mubr.msk.bf16.mxu1 %vm253_vm2, %v1692_v17 }
  0x1d   :  { %1610 = vmatmul.mubr.msk.bf16.gmra.mxu0 %vm253_vm2, %v1677_v14  ;;  %1642 = vmatmul.mubr.msk.bf16.gmra.mxu1 %vm253_vm2, %v1693_v19 }
  0x1e   :  { %1613 = vmatprep.mubr.msk.bf16.mxu0 %vm253_vm2, %v1678_v15  ;;  %1645 = vmatprep.mubr.msk.bf16.mxu1 %vm253_vm2, %v1694_v21 }
  0x25   :  { %1614 = vmatmul.mubr.msk.bf16.gmra.mxu0 %vm253_vm2, %v1679_v18  ;;  %1646 = vmatmul.mubr.msk.bf16.gmra.mxu1 %vm253_vm2, %v1695_v23 }
  0x26   :  { %1617 = vmatprep.mubr.msk.bf16.mxu0 %vm253_vm2, %v1680_v20  ;;  %1649 = vmatprep.mubr.msk.bf16.mxu1 %vm253_vm2, %v1696_v25 }
  0x2d   :  { %1618 = vmatmul.mubr.msk.bf16.gmra.mxu0 %vm253_vm2, %v1681_v22  ;;  %1650 = vmatmul.mubr.msk.bf16.gmra.mxu1 %vm253_vm2, %v1697_v27 }
  0x2e   :  { %1621 = vmatprep.mubr.msk.bf16.mxu0 %vm253_vm2, %v1682_v24  ;;  %1653 = vmatprep.mubr.msk.bf16.mxu1 %vm253_vm2, %v1698_v29 }
  0x35   :  { %1622 = vmatmul.mubr.msk.bf16.gmra.mxu0 %vm253_vm2, %v1683_v26  ;;  %1654 = vmatmul.mubr.msk.bf16.gmra.mxu1 %vm253_vm2, %v1699_v31 }
  0x36   :  { %1625 = vmatprep.mubr.msk.bf16.mxu0 %vm253_vm2, %v1684_v28  ;;  %1657 = vmatprep.mubr.msk.bf16.mxu1 %vm253_vm2, %v1700_v33 }
  0x3d   :  { %1626 = vmatmul.mubr.msk.bf16.gmra.mxu0 %vm253_vm2, %v1685_v30  ;;  %1658 = vmatmul.mubr.msk.bf16.gmra.mxu1 %vm253_vm2, %v1701_v35 }
  0x3e   :  { %1629 = vmatprep.mubr.msk.bf16.mxu0 %vm253_vm2, %v1686_v32  ;;  %1661 = vmatprep.mubr.msk.bf16.mxu1 %vm253_vm2, %v1702_v36 }
  0x45   :  { %1630 = vmatmul.mubr.msk.bf16.gmra.mxu0 %vm253_vm2, %v1687_v34  ;;  %1662 = vmatmul.mubr.msk.bf16.gmra.mxu1 %vm253_vm2, %v1703_v37 }
  0xcd   :  { %v1603_v38 = vpop.f32.mrf.mxu0  ;;  %v1862_v48 = vpop.f32.mrf.mxu1 }
  0xce   :  { %v1038_v49 = vmul.f32 %v1603_v38, %v1603_v38 }
  0xcf   :  { %v391_v39 = vpop.f32.mrf.mxu0  ;;  %v1867_v53 = vpop.f32.mrf.mxu1 }
  0xd0   :  { %v1036_v43 = vmul.f32 %v391_v39, %v391_v39 }
  0xd1   :  { %v1604_v40 = vpop.f32.mrf.mxu0  ;;  %v1869_v58 = vpop.f32.mrf.mxu1 }
  0xd2   :  { %v1380_v41 = vpack.c.bf16 %v1604_v40, %v1603_v38  ;;  %v1039_v54 = vmul.f32 %v1604_v40, %v1604_v40  ;;  %v1460_v0 = vpack.c.bf16 %v1869_v58, %v1862_v48 }
  0xd3   :  { %v394_v42 = vpop.f32.mrf.mxu0  ;;  %v1873_v1 = vpop.f32.mrf.mxu1 }
  0xd4   :  { %1532 = vst [vmem:[%s2155_s2 + $0x8] sm:$0xff] %v1380_v41   ;;  %v1375_v44 = vpack.c.bf16 %v394_v42, %v391_v39  ;;  %v966_v45 = vadd.f32 %v394_v42, %v391_v39  ;;  %v1037_v46 = vmul.f32 %v394_v42, %v394_v42  ;;  %1548 = vst [vmem:[%s2155_s2 + $0x88] sm:$0xff] %v1460_v0  }
  0xd5   :  { %v1607_v47 = vpop.f32.mrf.mxu0  ;;  %v1455_v7 = vpack.c.bf16 %v1873_v1, %v1867_v53  ;;  %v1883_v8 = vpop.f32.mrf.mxu1 }
  0xd6   :  { %1376 = vst [vmem:[%s2155_s2] sm:$0xff] %v1375_v44   ;;  %v967_v50 = vadd.f32 %v1603_v38, %v966_v45  ;;  %v1100_v51 = vadd.f32 %v1037_v46, %v1036_v43  ;;  %v1042_v9 = vmul.f32 %v1607_v47, %v1607_v47 }
  0xd7   :  { %v407_v52 = vpop.f32.mrf.mxu0  ;;  %1547 = vst [vmem:[%s2155_s2 + $0x80] sm:$0xff] %v1455_v7   ;;  %v1891_v13 = vpop.f32.mrf.mxu1 }
  0xd8   :  { %v1101_v55 = vadd.f32 %v1100_v51, %v1038_v49  ;;  %v968_v56 = vadd.f32 %v1604_v40, %v967_v50  ;;  %v1040_v60 = vmul.f32 %v407_v52, %v407_v52 }
  0xd9   :  { %v1608_v57 = vpop.f32.mrf.mxu0  ;;  %v1893_v18 = vpop.f32.mrf.mxu1 }
  0xda   :  { %v969_v59 = vadd.f32 %v968_v56, %v407_v52  ;;  %v1102_v61 = vadd.f32 %v1101_v55, %v1039_v54  ;;  %v1390_v62 = vpack.c.bf16 %v1608_v57, %v1607_v47  ;;  %v1043_v14 = vmul.f32 %v1608_v57, %v1608_v57 }
  0xdb   :  { %v410_v63 = vpop.f32.mrf.mxu0  ;;  %v1470_v24 = vpack.c.bf16 %v1893_v18, %v1883_v8  ;;  %v1897_v25 = vpop.f32.mrf.mxu1 }
  0xdc   :  { %v1103_v2 = vadd.f32 %v1102_v61, %v1040_v60  ;;  %1534 = vst [vmem:[%s2155_s2 + $0x18] sm:$0xff] %v1390_v62   ;;  %v1385_v3 = vpack.c.bf16 %v410_v63, %v407_v52  ;;  %v970_v4 = vadd.f32 %v969_v59, %v410_v63  ;;  %v1041_v5 = vmul.f32 %v410_v63, %v410_v63 }
  0xdd   :  { %v1611_v6 = vpop.f32.mrf.mxu0  ;;  %1550 = vst [vmem:[%s2155_s2 + $0x98] sm:$0xff] %v1470_v24   ;;  %v1465_v31 = vpack.c.bf16 %v1897_v25, %v1891_v13  ;;  %v1907_v32 = vpop.f32.mrf.mxu1 }
  0xde   :  { %1533 = vst [vmem:[%s2155_s2 + $0x10] sm:$0xff] %v1385_v3   ;;  %v971_v10 = vadd.f32 %v1607_v47, %v970_v4  ;;  %v1104_v11 = vadd.f32 %v1103_v2, %v1041_v5  ;;  %v1046_v33 = vmul.f32 %v1611_v6, %v1611_v6 }
  0xdf   :  { %v423_v12 = vpop.f32.mrf.mxu0  ;;  %1549 = vst [vmem:[%s2155_s2 + $0x90] sm:$0xff] %v1465_v31   ;;  %v1915_v37 = vpop.f32.mrf.mxu1 }
  0xe0   :  { %v1105_v15 = vadd.f32 %v1104_v11, %v1042_v9  ;;  %v972_v16 = vadd.f32 %v1608_v57, %v971_v10  ;;  %v1044_v20 = vmul.f32 %v423_v12, %v423_v12 }
  0xe1   :  { %v1612_v17 = vpop.f32.mrf.mxu0  ;;  %v1917_v42 = vpop.f32.mrf.mxu1 }
  0xe2   :  { %v973_v19 = vadd.f32 %v972_v16, %v423_v12  ;;  %v1106_v21 = vadd.f32 %v1105_v15, %v1043_v14  ;;  %v1400_v22 = vpack.c.bf16 %v1612_v17, %v1611_v6  ;;  %v1047_v38 = vmul.f32 %v1612_v17, %v1612_v17 }
  0xe3   :  { %v426_v23 = vpop.f32.mrf.mxu0  ;;  %v1480_v49 = vpack.c.bf16 %v1917_v42, %v1907_v32  ;;  %v1921_v50 = vpop.f32.mrf.mxu1 }
  0xe4   :  { %v1107_v26 = vadd.f32 %v1106_v21, %v1044_v20  ;;  %1536 = vst [vmem:[%s2155_s2 + $0x28] sm:$0xff] %v1400_v22   ;;  %v1395_v27 = vpack.c.bf16 %v426_v23, %v423_v12  ;;  %v974_v28 = vadd.f32 %v973_v19, %v426_v23  ;;  %v1045_v29 = vmul.f32 %v426_v23, %v426_v23 }
  0xe5   :  { %v1615_v30 = vpop.f32.mrf.mxu0  ;;  %1552 = vst [vmem:[%s2155_s2 + $0xa8] sm:$0xff] %v1480_v49   ;;  %v1475_v57 = vpack.c.bf16 %v1921_v50, %v1915_v37  ;;  %v1931_v59 = vpop.f32.mrf.mxu1 }
  0xe6   :  { %1535 = vst [vmem:[%s2155_s2 + $0x20] sm:$0xff] %v1395_v27   ;;  %v975_v34 = vadd.f32 %v1611_v6, %v974_v28  ;;  %v1108_v35 = vadd.f32 %v1107_v26, %v1045_v29  ;;  %v1050_v60 = vmul.f32 %v1615_v30, %v1615_v30 }
  0xe7   :  { %v439_v36 = vpop.f32.mrf.mxu0  ;;  %1551 = vst [vmem:[%s2155_s2 + $0xa0] sm:$0xff] %v1475_v57   ;;  %v1939_v0 = vpop.f32.mrf.mxu1 }
  0xe8   :  { %v1109_v39 = vadd.f32 %v1108_v35, %v1046_v33  ;;  %v976_v40 = vadd.f32 %v1612_v17, %v975_v34  ;;  %v1048_v44 = vmul.f32 %v439_v36, %v439_v36 }
  0xe9   :  { %v1616_v41 = vpop.f32.mrf.mxu0  ;;  %v1941_v6 = vpop.f32.mrf.mxu1 }
  0xea   :  { %v977_v43 = vadd.f32 %v976_v40, %v439_v36  ;;  %v1110_v45 = vadd.f32 %v1109_v39, %v1047_v38  ;;  %v1410_v46 = vpack.c.bf16 %v1616_v41, %v1615_v30  ;;  %v1051_v2 = vmul.f32 %v1616_v41, %v1616_v41 }
  0xeb   :  { %v442_v47 = vpop.f32.mrf.mxu0  ;;  %v1490_v14 = vpack.c.bf16 %v1941_v6, %v1931_v59  ;;  %v1945_v15 = vpop.f32.mrf.mxu1 }
  0xec   :  { %v1111_v51 = vadd.f32 %v1110_v45, %v1048_v44  ;;  %1538 = vst [vmem:[%s2155_s2 + $0x38] sm:$0xff] %v1410_v46   ;;  %v1405_v52 = vpack.c.bf16 %v442_v47, %v439_v36  ;;  %v978_v54 = vadd.f32 %v977_v43, %v442_v47  ;;  %v1049_v55 = vmul.f32 %v442_v47, %v442_v47 }
  0xed   :  { %v1619_v56 = vpop.f32.mrf.mxu0  ;;  %1554 = vst [vmem:[%s2155_s2 + $0xb8] sm:$0xff] %v1490_v14   ;;  %v1485_v22 = vpack.c.bf16 %v1945_v15, %v1939_v0  ;;  %v1955_v23 = vpop.f32.mrf.mxu1 }
  0xee   :  { %1537 = vst [vmem:[%s2155_s2 + $0x30] sm:$0xff] %v1405_v52   ;;  %v979_v61 = vadd.f32 %v1615_v30, %v978_v54  ;;  %v1112_v62 = vadd.f32 %v1111_v51, %v1049_v55  ;;  %v1054_v24 = vmul.f32 %v1619_v56, %v1619_v56 }
  0xef   :  { %v455_v63 = vpop.f32.mrf.mxu0  ;;  %1553 = vst [vmem:[%s2155_s2 + $0xb0] sm:$0xff] %v1485_v22   ;;  %v1963_v29 = vpop.f32.mrf.mxu1 }
  0xf0   :  { %v1113_v3 = vadd.f32 %v1112_v62, %v1050_v60  ;;  %v980_v4 = vadd.f32 %v1616_v41, %v979_v61  ;;  %v1052_v9 = vmul.f32 %v455_v63, %v455_v63 }
  0xf1   :  { %v1620_v5 = vpop.f32.mrf.mxu0  ;;  %v1965_v35 = vpop.f32.mrf.mxu1 }
  0xf2   :  { %v981_v7 = vadd.f32 %v980_v4, %v455_v63  ;;  %v1114_v10 = vadd.f32 %v1113_v3, %v1051_v2  ;;  %v1420_v11 = vpack.c.bf16 %v1620_v5, %v1619_v56  ;;  %v1055_v30 = vmul.f32 %v1620_v5, %v1620_v5 }
  0xf3   :  { %v458_v12 = vpop.f32.mrf.mxu0  ;;  %v1500_v43 = vpack.c.bf16 %v1965_v35, %v1955_v23  ;;  %v1969_v44 = vpop.f32.mrf.mxu1 }
  0xf4   :  { %v1115_v16 = vadd.f32 %v1114_v10, %v1052_v9  ;;  %1540 = vst [vmem:[%s2155_s2 + $0x48] sm:$0xff] %v1420_v11   ;;  %v1415_v17 = vpack.c.bf16 %v458_v12, %v455_v63  ;;  %v982_v19 = vadd.f32 %v981_v7, %v458_v12  ;;  %v1053_v20 = vmul.f32 %v458_v12, %v458_v12 }
  0xf5   :  { %v1623_v21 = vpop.f32.mrf.mxu0  ;;  %1556 = vst [vmem:[%s2155_s2 + $0xc8] sm:$0xff] %v1500_v43   ;;  %v1495_v52 = vpack.c.bf16 %v1969_v44, %v1963_v29  ;;  %v1979_v54 = vpop.f32.mrf.mxu1 }
  0xf6   :  { %1539 = vst [vmem:[%s2155_s2 + $0x40] sm:$0xff] %v1415_v17   ;;  %v983_v26 = vadd.f32 %v1619_v56, %v982_v19  ;;  %v1116_v27 = vadd.f32 %v1115_v16, %v1053_v20  ;;  %v1058_v55 = vmul.f32 %v1623_v21, %v1623_v21 }
  0xf7   :  { %v471_v28 = vpop.f32.mrf.mxu0  ;;  %1555 = vst [vmem:[%s2155_s2 + $0xc0] sm:$0xff] %v1495_v52   ;;  %v1987_v61 = vpop.f32.mrf.mxu1 }
  0xf8   :  { %v1117_v31 = vadd.f32 %v1116_v27, %v1054_v24  ;;  %v984_v33 = vadd.f32 %v1620_v5, %v983_v26  ;;  %v1056_v38 = vmul.f32 %v471_v28, %v471_v28 }
  0xf9   :  { %v1624_v34 = vpop.f32.mrf.mxu0  ;;  %v1989_v4 = vpop.f32.mrf.mxu1 }
  0xfa   :  { %v985_v36 = vadd.f32 %v984_v33, %v471_v28  ;;  %v1118_v39 = vadd.f32 %v1117_v31, %v1055_v30  ;;  %v1430_v40 = vpack.c.bf16 %v1624_v34, %v1623_v21  ;;  %v1059_v62 = vmul.f32 %v1624_v34, %v1624_v34 }
  0xfb   :  { %v474_v41 = vpop.f32.mrf.mxu0  ;;  %v1510_v12 = vpack.c.bf16 %v1989_v4, %v1979_v54  ;;  %v1993_v14 = vpop.f32.mrf.mxu1 }
  0xfc   :  { %v1119_v45 = vadd.f32 %v1118_v39, %v1056_v38  ;;  %1542 = vst [vmem:[%s2155_s2 + $0x58] sm:$0xff] %v1430_v40   ;;  %v1425_v46 = vpack.c.bf16 %v474_v41, %v471_v28  ;;  %v986_v47 = vadd.f32 %v985_v36, %v474_v41  ;;  %v1057_v49 = vmul.f32 %v474_v41, %v474_v41 }
  0xfd   :  { %v1627_v51 = vpop.f32.mrf.mxu0  ;;  %1558 = vst [vmem:[%s2155_s2 + $0xd8] sm:$0xff] %v1510_v12   ;;  %v1505_v22 = vpack.c.bf16 %v1993_v14, %v1987_v61  ;;  %v2003_v24 = vpop.f32.mrf.mxu1 }
  0xfe   :  { %1541 = vst [vmem:[%s2155_s2 + $0x50] sm:$0xff] %v1425_v46   ;;  %v987_v56 = vadd.f32 %v1623_v21, %v986_v47  ;;  %v1120_v57 = vadd.f32 %v1119_v45, %v1057_v49  ;;  %v1062_v26 = vmul.f32 %v1627_v51, %v1627_v51 }
  0xff   :  { %v487_v60 = vpop.f32.mrf.mxu0  ;;  %1557 = vst [vmem:[%s2155_s2 + $0xd0] sm:$0xff] %v1505_v22   ;;  %v2011_v31 = vpop.f32.mrf.mxu1 }
 0x100   :  { %v1121_v63 = vadd.f32 %v1120_v57, %v1058_v55  ;;  %v988_v2 = vadd.f32 %v1624_v34, %v987_v56  ;;  %v1060_v7 = vmul.f32 %v487_v60, %v487_v60 }
 0x101   :  { %v1628_v3 = vpop.f32.mrf.mxu0  ;;  %v2013_v39 = vpop.f32.mrf.mxu1 }
 0x102   :  { %v989_v5 = vadd.f32 %v988_v2, %v487_v60  ;;  %v1122_v9 = vadd.f32 %v1121_v63, %v1059_v62  ;;  %v1440_v10 = vpack.c.bf16 %v1628_v3, %v1627_v51  ;;  %v1063_v33 = vmul.f32 %v1628_v3, %v1628_v3 }
 0x103   :  { %v490_v11 = vpop.f32.mrf.mxu0  ;;  %v1520_v47 = vpack.c.bf16 %v2013_v39, %v2003_v24  ;;  %v2017_v49 = vpop.f32.mrf.mxu1 }
 0x104   :  { %v1123_v16 = vadd.f32 %v1122_v9, %v1060_v7  ;;  %1544 = vst [vmem:[%s2155_s2 + $0x68] sm:$0xff] %v1440_v10   ;;  %v1435_v17 = vpack.c.bf16 %v490_v11, %v487_v60  ;;  %v990_v19 = vadd.f32 %v989_v5, %v490_v11  ;;  %v1061_v20 = vmul.f32 %v490_v11, %v490_v11 }
 0x105   :  { %v1631_v21 = vpop.f32.mrf.mxu0  ;;  %1560 = vst [vmem:[%s2155_s2 + $0xe8] sm:$0xff] %v1520_v47   ;;  %v1515_v57 = vpack.c.bf16 %v2017_v49, %v2011_v31  ;;  %v2027_v60 = vpop.f32.mrf.mxu1  ;;  %v1068_v11 = vmul.f32 %v1867_v53, %v1867_v53 }
 0x106   :  { %1543 = vst [vmem:[%s2155_s2 + $0x60] sm:$0xff] %v1435_v17   ;;  %v991_v27 = vadd.f32 %v1627_v51, %v990_v19  ;;  %v1124_v28 = vadd.f32 %v1123_v16, %v1061_v20  ;;  %v1066_v62 = vmul.f32 %v1631_v21, %v1631_v21 }
 0x107   :  { %v503_v30 = vpop.f32.mrf.mxu0  ;;  %1559 = vst [vmem:[%s2155_s2 + $0xe0] sm:$0xff] %v1515_v57   ;;  %v1077_v57 = vmul.f32 %v1921_v50, %v1921_v50 }
 0x108   :  { %v1125_v34 = vadd.f32 %v1124_v28, %v1062_v26  ;;  %v992_v36 = vadd.f32 %v1628_v3, %v991_v27  ;;  %v1064_v41 = vmul.f32 %v503_v30, %v503_v30  ;;  %v2035_v3 = vpop.f32.mrf.mxu1 }
 0x109   :  { %v1632_v38 = vpop.f32.mrf.mxu0 }
 0x10a   :  { %v993_v40 = vadd.f32 %v992_v36, %v503_v30  ;;  %v1126_v43 = vadd.f32 %v1125_v34, %v1063_v33  ;;  %v1450_v45 = vpack.c.bf16 %v1632_v38, %v1631_v21  ;;  %v1067_v5 = vmul.f32 %v1632_v38, %v1632_v38  ;;  %v2037_v10 = vpop.f32.mrf.mxu1 }
 0x10b   :  { %v506_v46 = vpop.f32.mrf.mxu0  ;;  %v1530_v17 = vpack.c.bf16 %v2037_v10, %v2027_v60  ;;  %v1072_v36 = vmul.f32 %v1891_v13, %v1891_v13 }
 0x10c   :  { %v1127_v51 = vadd.f32 %v1126_v43, %v1064_v41  ;;  %1546 = vst [vmem:[%s2155_s2 + $0x78] sm:$0xff] %v1450_v45   ;;  %v1445_v52 = vpack.c.bf16 %v506_v46, %v503_v30  ;;  %v994_v55 = vadd.f32 %v993_v40, %v506_v46  ;;  %v1065_v56 = vmul.f32 %v506_v46, %v506_v46  ;;  %v2044_v19 = vpop.f32.mrf.mxu1 }
 0x10d   :  { %1562 = vst [vmem:[%s2155_s2 + $0xf8] sm:$0xff] %v1530_v17   ;;  %v1525_v26 = vpack.c.bf16 %v2044_v19, %v2035_v3  ;;  %v1073_v41 = vmul.f32 %v1897_v25, %v1897_v25  ;;  %v1074_v43 = vmul.f32 %v1883_v8, %v1883_v8 }
 0x10e   :  { %1545 = vst [vmem:[%s2155_s2 + $0x70] sm:$0xff] %v1445_v52   ;;  %v995_v63 = vadd.f32 %v1631_v21, %v994_v55  ;;  %v1128_v2 = vadd.f32 %v1127_v51, %v1065_v56  ;;  %v1069_v21 = vmul.f32 %v1873_v1, %v1873_v1  ;;  %v1076_v52 = vmul.f32 %v1915_v37, %v1915_v37 }
 0x10f   :  { %1561 = vst [vmem:[%s2155_s2 + $0xf0] sm:$0xff] %v1525_v26  }
 0x110   :  { %v996_v7 = vadd.f32 %v1632_v38, %v995_v63  ;;  %v1129_v9 = vadd.f32 %v1128_v2, %v1066_v62 }
 0x112   :  { %v1130_v12 = vadd.f32 %v1129_v9, %v1067_v5  ;;  %v997_v16 = vadd.f32 %v996_v7, %v1867_v53  ;;  %v1070_v53 = vmul.f32 %v1862_v48, %v1862_v48  ;;  %v1080_v7 = vmul.f32 %v1939_v0, %v1939_v0 }
 0x114   :  { %v998_v20 = vadd.f32 %v997_v16, %v1873_v1  ;;  %v1131_v22 = vadd.f32 %v1130_v12, %v1068_v11  ;;  %v1071_v1 = vmul.f32 %v1869_v58, %v1869_v58  ;;  %v1081_v12 = vmul.f32 %v1945_v15, %v1945_v15 }
 0x116   :  { %v999_v27 = vadd.f32 %v1862_v48, %v998_v20  ;;  %v1132_v28 = vadd.f32 %v1131_v22, %v1069_v21  ;;  %v1084_v22 = vmul.f32 %v1963_v29, %v1963_v29 }
 0x118   :  { %v1133_v30 = vadd.f32 %v1132_v28, %v1070_v53  ;;  %v1000_v33 = vadd.f32 %v1869_v58, %v999_v27  ;;  %v1075_v58 = vmul.f32 %v1893_v18, %v1893_v18  ;;  %v1085_v27 = vmul.f32 %v1969_v44, %v1969_v44 }
 0x11a   :  { %v1001_v34 = vadd.f32 %v1000_v33, %v1891_v13  ;;  %v1134_v38 = vadd.f32 %v1133_v30, %v1071_v1 }
 0x11c   :  { %v1135_v40 = vadd.f32 %v1134_v38, %v1072_v36  ;;  %v1002_v48 = vadd.f32 %v1001_v34, %v1897_v25  ;;  %v1088_v34 = vmul.f32 %v1987_v61, %v1987_v61 }
 0x11e   :  { %v1003_v45 = vadd.f32 %v1883_v8, %v1002_v48  ;;  %v1136_v46 = vadd.f32 %v1135_v40, %v1073_v41  ;;  %v1078_v8 = vmul.f32 %v1907_v32, %v1907_v32  ;;  %v1089_v40 = vmul.f32 %v1993_v14, %v1993_v14 }
 0x120   :  { %v1137_v47 = vadd.f32 %v1136_v46, %v1074_v43  ;;  %v1004_v51 = vadd.f32 %v1893_v18, %v1003_v45  ;;  %v1079_v18 = vmul.f32 %v1917_v42, %v1917_v42  ;;  %v1092_v46 = vmul.f32 %v2011_v31, %v2011_v31 }
 0x122   :  { %v1005_v13 = vadd.f32 %v1004_v51, %v1915_v37  ;;  %v1138_v55 = vadd.f32 %v1137_v47, %v1075_v58  ;;  %v1093_v51 = vmul.f32 %v2017_v49, %v2017_v49 }
 0x124   :  { %v1139_v56 = vadd.f32 %v1138_v55, %v1076_v52  ;;  %v1006_v25 = vadd.f32 %v1005_v13, %v1921_v50 }
 0x126   :  { %v1007_v62 = vadd.f32 %v1907_v32, %v1006_v25  ;;  %v1140_v63 = vadd.f32 %v1139_v56, %v1077_v57  ;;  %v1082_v32 = vmul.f32 %v1931_v59, %v1931_v59  ;;  %v1096_v25 = vmul.f32 %v2035_v3, %v2035_v3 }
 0x128   :  { %v1141_v2 = vadd.f32 %v1140_v63, %v1078_v8  ;;  %v1008_v5 = vadd.f32 %v1917_v42, %v1007_v62  ;;  %v1083_v42 = vmul.f32 %v1941_v6, %v1941_v6  ;;  %v1097_v62 = vmul.f32 %v2044_v19, %v2044_v19 }
 0x12a   :  { %v1009_v37 = vadd.f32 %v1008_v5, %v1939_v0  ;;  %v1142_v9 = vadd.f32 %v1141_v2, %v1079_v18 }
 0x12c   :  { %v1143_v11 = vadd.f32 %v1142_v9, %v1080_v7  ;;  %v1010_v50 = vadd.f32 %v1009_v37, %v1945_v15 }
 0x12e   :  { %v1011_v16 = vadd.f32 %v1931_v59, %v1010_v50  ;;  %v1144_v17 = vadd.f32 %v1143_v11, %v1081_v12  ;;  %v1086_v59 = vmul.f32 %v1955_v23, %v1955_v23 }
 0x130   :  { %v1145_v20 = vadd.f32 %v1144_v17, %v1082_v32  ;;  %v1012_v21 = vadd.f32 %v1941_v6, %v1011_v16  ;;  %v1087_v6 = vmul.f32 %v1965_v35, %v1965_v35 }
 0x132   :  { %v1013_v0 = vadd.f32 %v1012_v21, %v1963_v29  ;;  %v1146_v26 = vadd.f32 %v1145_v20, %v1083_v42 }
 0x134   :  { %v1147_v53 = vadd.f32 %v1146_v26, %v1084_v22  ;;  %v1014_v15 = vadd.f32 %v1013_v0, %v1969_v44 }
 0x136   :  { %v1015_v28 = vadd.f32 %v1955_v23, %v1014_v15  ;;  %v1148_v1 = vadd.f32 %v1147_v53, %v1085_v27  ;;  %v1090_v23 = vmul.f32 %v1979_v54, %v1979_v54 }
 0x138   :  { %v1149_v30 = vadd.f32 %v1148_v1, %v1086_v59  ;;  %v1016_v33 = vadd.f32 %v1965_v35, %v1015_v28  ;;  %v1091_v35 = vmul.f32 %v1989_v4, %v1989_v4 }
 0x13a   :  { %v1017_v29 = vadd.f32 %v1016_v33, %v1987_v61  ;;  %v1150_v36 = vadd.f32 %v1149_v30, %v1087_v6 }
 0x13c   :  { %v1151_v38 = vadd.f32 %v1150_v36, %v1088_v34  ;;  %v1018_v44 = vadd.f32 %v1017_v29, %v1993_v14 }
 0x13e   :  { %v1019_v48 = vadd.f32 %v1979_v54, %v1018_v44  ;;  %v1152_v41 = vadd.f32 %v1151_v38, %v1089_v40  ;;  %v1094_v54 = vmul.f32 %v2003_v24, %v2003_v24 }
 0x140   :  { %v1153_v43 = vadd.f32 %v1152_v41, %v1090_v23  ;;  %v1020_v45 = vadd.f32 %v1989_v4, %v1019_v48  ;;  %v1095_v4 = vmul.f32 %v2013_v39, %v2013_v39 }
 0x142   :  { %v1021_v61 = vadd.f32 %v1020_v45, %v2011_v31  ;;  %v1154_v58 = vadd.f32 %v1153_v43, %v1091_v35 }
 0x144   :  { %v1155_v47 = vadd.f32 %v1154_v58, %v1092_v46  ;;  %v1022_v14 = vadd.f32 %v1021_v61, %v2017_v49 }
 0x146   :  { %v1023_v13 = vadd.f32 %v2003_v24, %v1022_v14  ;;  %v1156_v52 = vadd.f32 %v1155_v47, %v1093_v51  ;;  %v1098_v24 = vmul.f32 %v2027_v60, %v2027_v60 }
 0x148   :  { %v1157_v55 = vadd.f32 %v1156_v52, %v1094_v54  ;;  %v1024_v56 = vadd.f32 %v2013_v39, %v1023_v13  ;;  %v1099_v39 = vmul.f32 %v2037_v10, %v2037_v10 }
 0x14a   :  { %v1025_v31 = vadd.f32 %v1024_v56, %v2035_v3  ;;  %v1158_v57 = vadd.f32 %v1157_v55, %v1095_v4 }
 0x14c   :  { %v1159_v8 = vadd.f32 %v1158_v57, %v1096_v25  ;;  %v1026_v49 = vadd.f32 %v1025_v31, %v2044_v19 }
 0x14e   :  { %v1027_v63 = vadd.f32 %v2027_v60, %v1026_v49  ;;  %v1160_v18 = vadd.f32 %v1159_v8, %v1097_v62 }
 0x150   :  { %v1028_v2 = vadd.f32 %v2037_v10, %v1027_v63  ;;  %v1161_v5 = vadd.f32 %v1160_v18, %v1098_v24 }
 0x152   :  { %v1029_v3 = vrot.slane %v1028_v2, 4  ;;  %v1162_v37 = vadd.f32 %v1161_v5, %v1099_v39 }
 0x154   :  { %v1030_v7 = vadd.f32 %v1029_v3, %v1028_v2  ;;  %v1163_v9 = vrot.slane %v1162_v37, 4 }
 0x156   :  { %v1031_v11 = vrot.slane %v1030_v7, 2  ;;  %v1164_v50 = vadd.f32 %v1163_v9, %v1162_v37 }
 0x158   :  { %v1032_v12 = vadd.f32 %v1031_v11, %v1030_v7  ;;  %v1165_v19 = vrot.slane %v1164_v50, 2 }
 0x15a   :  { %v1033_v32 = vrot.slane %v1032_v12, 1  ;;  %v1166_v16 = vadd.f32 %v1165_v19, %v1164_v50 }
 0x15c   :  { %v1034_v17 = vadd.f32 %v1033_v32, %v1032_v12  ;;  %v1167_v42 = vrot.slane %v1166_v16, 1 }
 0x15e   :  { %1035 = vst [vmem:[%s2156_s3] sm:$0x1] %v1034_v17  ;;  %v1168_v60 = vadd.f32 %v1167_v42, %v1166_v16 }
 0x160   :  { %1169 = vst [vmem:[%s2156_s3 + $0x1] sm:$0x1] %v1168_v60 }

</bundles_post_ra>
